<compile_context>
chip_gen: v5e
topology: v5e:2x2
jax: 0.10.0
libtpu: 0.0.40
codegen_flags: <defaults>
</compile_context>

<pallas_src>
import jax
import jax.numpy as jnp
from jax.experimental import pallas as pl
from jax.experimental.pallas import tpu as pltpu


def pienet_kernel(local_ref, glob_ref, w1_ref, w2_ref, wfc_ref, bfc_ref,
                  gamma_ref, beta_ref, out_ref, attn_ref, res_ref):
    TB, L, d_in = local_ref.shape
    d_out = glob_ref.shape[-1]
    n_head = out_ref.shape[0]

    # ---- fused self-attention matmuls over the whole (TB*L) slab ----
    xb = local_ref[...].astype(jnp.bfloat16)                      # MXU operand
    x3 = local_ref[...].astype(jnp.float32)                       # f32 copy for VPU pooling
    x2b = xb.reshape(TB * L, d_in)

    h = jnp.tanh(jnp.dot(x2b, w1_ref[...],
                         preferred_element_type=jnp.float32))     # (TB*L, d_h), f32
    # Tiny N=n_head matmul kept in f32: essentially free, and avoids compounding
    # bf16 error that then goes through the softmax.
    logits = jnp.dot(h, w2_ref[...],
                     preferred_element_type=jnp.float32)          # (TB*L, n_head)
    logits3 = logits.reshape(TB, L, n_head)

    # softmax over the sequence (L) axis, f32; divide on the EUP via approx recip.
    m = jnp.max(logits3, axis=1, keepdims=True)                   # (TB, 1, n_head)
    e = jnp.exp(logits3 - m)
    attn3 = e * pl.reciprocal(jnp.sum(e, axis=1, keepdims=True), approx=True)
    attn_ref[...] = attn3.astype(attn_ref.dtype)                  # (TB, L, n_head)

    # ---- VPU pooling, stacked head-major:
    #      pooled2[h*TB + b, :] = sum_l attn[b, l, h] * x[b, l, :]
    pooled = [jnp.sum(attn3[:, :, hh:hh + 1] * x3, axis=1)        # (TB, d_in) each
              for hh in range(n_head)]
    pooled2 = pooled[0] if n_head == 1 else jnp.concatenate(pooled, axis=0)

    # ---- stacked tail: one FC matmul + sigmoid + residual + LayerNorm for all heads
    z = jnp.dot(pooled2.astype(jnp.bfloat16), wfc_ref[...],
                preferred_element_type=jnp.float32) + bfc_ref[...]    # (n_head*TB, d_out)
    res = pl.reciprocal(1.0 + jnp.exp(-z), approx=True)               # sigmoid; dropout p=0

    g = glob_ref[...].astype(jnp.float32)                             # (TB, d_out)
    gg = g if n_head == 1 else jnp.concatenate([g] * n_head, axis=0)  # broadcast over heads
    y = gg + res
    mu = jnp.mean(y, axis=-1, keepdims=True)
    var = jnp.mean((y - mu) ** 2, axis=-1, keepdims=True)
    out = (y - mu) * jax.lax.rsqrt(var + 1e-5) * gamma_ref[...] + beta_ref[...]

    res_ref[...] = res.reshape(n_head, TB, d_out).astype(res_ref.dtype)
    out_ref[...] = out.reshape(n_head, TB, d_out).astype(out_ref.dtype)


def _vmem_budget_and_cores():
    """Generation-aware VMEM budget (bytes) and TensorCore count sharing the
    parallel grid axis.  Falls back to v7x-safe defaults if the query fails."""
    cap = None
    try:
        cap = int(pltpu.get_tpu_info().vmem_capacity_bytes)
    except Exception:
        cap = None
    if not cap:
        cap = 64 * 1024 * 1024            # assume the smallest generation (v7x)
    budget = int(0.75 * cap)              # headroom for compiler-internal scratch

    cores = 1
    try:
        kind = jax.devices()[0].device_kind.lower()
        if "v7" in kind or "7x" in kind:
            cores = 2                     # v7x: 2 TensorCores per chip
    except Exception:
        pass
    return budget, cores


def _vmem_estimate(tb, L, d_in, d_h, d_out, n_head, in_bytes):
    """Per-grid-step VMEM footprint: double-buffered I/O blocks, resident params,
    and the in-kernel intermediates (which dominate once TB grows)."""
    f32, bf16 = 4, 2
    blocks = 2 * (tb * L * d_in * in_bytes               # local block
                  + tb * d_out * in_bytes                # global block
                  + 2 * n_head * tb * d_out * f32        # out + res blocks
                  + tb * L * n_head * f32)               # attn block
    params = 2 * (d_in * d_h * bf16 + d_h * n_head * f32
                  + d_in * d_out * bf16 + 3 * d_out * f32)
    inter = (tb * L * d_in * (f32 + bf16)                # x3 + xb copies
             + tb * L * d_h * f32                        # h
             + 3 * tb * L * n_head * f32                 # logits3 / e / attn3
             + tb * L * d_in * f32                       # one per-head pooling product
             + 2 * n_head * tb * d_in * f32              # pooled list + stacked slab
             + 6 * n_head * tb * d_out * f32)            # z / res / y / LayerNorm temps
    return blocks + params + inter


def _pick_batch_tile(B, L, d_in, d_h, d_out, n_head, in_bytes, vmem_budget, n_cores):
    """Largest TB (dividing B, with TB % 8 == 0 or TB == B) whose footprint fits
    the VMEM budget.  Only on multi-TensorCore parts (v7x) do we additionally
    require the step count B//TB to be a multiple of the core count (>= n_cores);
    on v5e/v6e a single grid step is allowed and preferred."""
    cands = [tb for tb in range(1, B + 1)
             if B % tb == 0 and (tb % 8 == 0 or tb == B)]

    def core_ok(tb):
        steps = B // tb
        return n_cores == 1 or (steps >= n_cores and steps % n_cores == 0)

    fitting = [tb for tb in cands
               if core_ok(tb)
               and _vmem_estimate(tb, L, d_in, d_h, d_out, n_head, in_bytes)
               <= vmem_budget]
    if fitting:
        return max(fitting)
    # Nothing fits the budget: fall back to the smallest candidate that satisfies
    # the core constraint (or the smallest candidate overall).
    for tb in cands:
        if core_ok(tb):
            return tb
    return cands[0]


def pienet_forward(local_feat, global_feat, params, n_embeds, batch_tile=None):
    """local_feat: (B, L, d_in), global_feat: (B, d_out).
    Returns (out, attn, res) with PIENet.forward semantics (pad_mask=None, p=0)."""
    B, L, d_in = local_feat.shape
    d_out = global_feat.shape[-1]
    d_h = params["w1"].shape[0]
    n_head = n_embeds

    # Weights pre-transposed to (in, out); large matmul operands in bf16, the tiny
    # W2 (N = n_head) in f32; bias / LayerNorm params in f32.
    w1_t = params["w1"].T.astype(jnp.bfloat16)            # (d_in, d_h)
    w2_t = params["w2"].T.astype(jnp.float32)             # (d_h, n_head)
    wfc_t = params["wfc"].T.astype(jnp.bfloat16)          # (d_in, d_out)
    bfc = params["bfc"].reshape(1, d_out).astype(jnp.float32)
    gamma = params["gamma"].reshape(1, d_out).astype(jnp.float32)
    beta = params["beta"].reshape(1, d_out).astype(jnp.float32)

    vmem_budget, n_cores = _vmem_budget_and_cores()
    in_bytes = jnp.dtype(local_feat.dtype).itemsize
    TB = (batch_tile if batch_tile is not None else
          _pick_batch_tile(B, L, d_in, d_h, d_out, n_head, in_bytes,
                           vmem_budget, n_cores))
    assert B % TB == 0

    out_dtype = local_feat.dtype
    wspec = lambda r, c: pl.BlockSpec((r, c), lambda b: (0, 0))

    out_hm, attn, res_hm = pl.pallas_call(
        pienet_kernel,
        out_shape=(
            jax.ShapeDtypeStruct((n_embeds, B, d_out), out_dtype),   # head-major
            jax.ShapeDtypeStruct((B, L, n_embeds), jnp.float32),
            jax.ShapeDtypeStruct((n_embeds, B, d_out), out_dtype),   # head-major
        ),
        grid_spec=pltpu.PrefetchScalarGridSpec(
            num_scalar_prefetch=0,
            grid=(B // TB,),
            in_specs=[
                pl.BlockSpec((TB, L, d_in), lambda b: (b, 0, 0)),
                pl.BlockSpec((TB, d_out), lambda b: (b, 0)),
                wspec(d_in, d_h),
                wspec(d_h, n_head),
                wspec(d_in, d_out),
                wspec(1, d_out),
                wspec(1, d_out),
                wspec(1, d_out),
            ],
            out_specs=[
                pl.BlockSpec((n_embeds, TB, d_out), lambda b: (0, b, 0)),
                pl.BlockSpec((TB, L, n_embeds), lambda b: (b, 0, 0)),
                pl.BlockSpec((n_embeds, TB, d_out), lambda b: (0, b, 0)),
            ],
        ),
        compiler_params=pltpu.CompilerParams(
            dimension_semantics=("parallel",),
            vmem_limit_bytes=vmem_budget),
    )(local_feat, global_feat, w1_t, w2_t, wfc_t, bfc, gamma, beta)

    out = jnp.swapaxes(out_hm, 0, 1)      # (B, n_embeds, d_out)
    res = jnp.swapaxes(res_hm, 0, 1)
    if n_embeds == 1:
        out, res = out[:, 0], res[:, 0]   # matches the squeezed reference path
    return out, attn, res


def pienet_ref(local_feat, global_feat, params, n_embeds):
    """Pure-JAX f32 reference (mirrors the PyTorch forward with pad_mask=None)."""
    x = local_feat.astype(jnp.float32)
    logits = jnp.tanh(x @ params["w1"].T) @ params["w2"].T       # (B, L, n_head)
    attn = jax.nn.softmax(logits, axis=1)
    pooled = jnp.einsum("blh,bld->bhd", attn, x)                 # (B, n_head, d_in)
    if n_embeds == 1:
        pooled = pooled[:, 0]
    res = jax.nn.sigmoid(pooled @ params["wfc"].T + params["bfc"])
    g = global_feat.astype(jnp.float32)
    if n_embeds > 1:
        g = jnp.repeat(g[:, None, :], n_embeds, axis=1)
    y = g + res
    mu = jnp.mean(y, axis=-1, keepdims=True)
    var = jnp.mean((y - mu) ** 2, axis=-1, keepdims=True)
    out = (y - mu) / jnp.sqrt(var + 1e-5) * params["gamma"] + params["beta"]
    return out, attn, res


def xavier_uniform(key, shape):
    fan_out, fan_in = shape
    bound = (6.0 / (fan_in + fan_out)) ** 0.5
    return jax.random.uniform(key, shape, jnp.float32, -bound, bound)


if __name__ == "__main__":
    # Small config: n_embeds=2, d_in=d_out=d_h=32, batch=16, seq=16.
    # (v5e/v6e: single grid step with TB=B=16; v7x: TB=8 -> 2 balanced steps.)
    B, L, d_in, d_out, d_h, n_embeds = 16, 16, 32, 32, 32, 2

    key = jax.random.PRNGKey(0)
    k_local, k_glob, k_w1, k_w2, k_wfc = jax.random.split(key, 5)

    local_feat = jax.random.normal(k_local, (B, L, d_in), jnp.float32)
    global_feat = jax.random.normal(k_glob, (B, d_out), jnp.float32)

    params = {
        "w1": xavier_uniform(k_w1, (d_h, d_in)),        # nn.Linear(d_in, d_h), no bias
        "w2": xavier_uniform(k_w2, (n_embeds, d_h)),    # nn.Linear(d_h, n_embeds), no bias
        "wfc": xavier_uniform(k_wfc, (d_out, d_in)),    # nn.Linear(d_in, d_out)
        "bfc": jnp.zeros((d_out,), jnp.float32),
        "gamma": jnp.ones((d_out,), jnp.float32),       # LayerNorm weight
        "beta": jnp.zeros((d_out,), jnp.float32),       # LayerNorm bias
    }

    out, attn, res = jax.block_until_ready(
        pienet_forward(local_feat, global_feat, params, n_embeds))

    out_r, attn_r, res_r = pienet_ref(local_feat, global_feat, params, n_embeds)
    assert out.shape == (B, n_embeds, d_out)
    assert attn.shape == (B, L, n_embeds)
    assert res.shape == (B, n_embeds, d_out)
    # Tolerances account for bf16 MXU inputs (f32 accumulation) and the EUP
    # approximate-reciprocal softmax/sigmoid.
    assert jnp.allclose(out, out_r, atol=2e-2, rtol=2e-2)
    assert jnp.allclose(attn, attn_r, atol=2e-2, rtol=2e-2)
    assert jnp.allclose(res, res_r, atol=2e-2, rtol=2e-2)

    print("KERNEL_OK")
</pallas_src>

<mosaic_0001>
module attributes {stable_mosaic.version = 11 : i64} {
  func.func @pienet_kernel(%arg0: i32, %arg1: memref<16x16x32xf32, #tpu.memory_space<vmem>>, %arg2: memref<16x32xf32, #tpu.memory_space<vmem>>, %arg3: memref<32x32xbf16, #tpu.memory_space<vmem>>, %arg4: memref<32x2xf32, #tpu.memory_space<vmem>>, %arg5: memref<32x32xbf16, #tpu.memory_space<vmem>>, %arg6: memref<1x32xf32, #tpu.memory_space<vmem>>, %arg7: memref<1x32xf32, #tpu.memory_space<vmem>>, %arg8: memref<1x32xf32, #tpu.memory_space<vmem>>, %arg9: memref<2x16x32xf32, #tpu.memory_space<vmem>>, %arg10: memref<16x16x2xf32, #tpu.memory_space<vmem>>, %arg11: memref<2x16x32xf32, #tpu.memory_space<vmem>>) attributes {dimension_semantics = [#tpu.dimension_semantics<parallel>], iteration_bounds = array<i64: 1>, scalar_prefetch = 0 : i64, scratch_operands = 0 : i64, tpu.core_type = #tpu.core_type<tc>, window_params = [{transform_indices = @transform_0, window_bounds = array<i64: 16, 16, 32>}, {transform_indices = @transform_1, window_bounds = array<i64: 16, 32>}, {pipeline_mode = #tpu.pipeline_mode<synchronous>, transform_indices = @transform_2, window_bounds = array<i64: 32, 32>}, {pipeline_mode = #tpu.pipeline_mode<synchronous>, transform_indices = @transform_3, window_bounds = array<i64: 32, 2>}, {pipeline_mode = #tpu.pipeline_mode<synchronous>, transform_indices = @transform_4, window_bounds = array<i64: 32, 32>}, {pipeline_mode = #tpu.pipeline_mode<synchronous>, transform_indices = @transform_5, window_bounds = array<i64: 1, 32>}, {pipeline_mode = #tpu.pipeline_mode<synchronous>, transform_indices = @transform_6, window_bounds = array<i64: 1, 32>}, {pipeline_mode = #tpu.pipeline_mode<synchronous>, transform_indices = @transform_7, window_bounds = array<i64: 1, 32>}, {transform_indices = @transform_8, window_bounds = array<i64: 2, 16, 32>}, {transform_indices = @transform_9, window_bounds = array<i64: 16, 16, 2>}, {transform_indices = @transform_10, window_bounds = array<i64: 2, 16, 32>}]} {
    %c0 = arith.constant 0 : index
    %c0_0 = arith.constant 0 : index
    %c0_1 = arith.constant 0 : index
    %0 = vector.load %arg1[%c0, %c0_0, %c0_1] : memref<16x16x32xf32, #tpu.memory_space<vmem>>, vector<16x16x32xf32>
    %1 = arith.truncf %0 : vector<16x16x32xf32> to vector<16x16x32xbf16>
    %c0_2 = arith.constant 0 : index
    %c0_3 = arith.constant 0 : index
    %c0_4 = arith.constant 0 : index
    %2 = vector.load %arg1[%c0_2, %c0_3, %c0_4] : memref<16x16x32xf32, #tpu.memory_space<vmem>>, vector<16x16x32xf32>
    %3 = vector.shape_cast %1 : vector<16x16x32xbf16> to vector<256x32xbf16>
    %c0_5 = arith.constant 0 : index
    %c0_6 = arith.constant 0 : index
    %4 = vector.load %arg3[%c0_5, %c0_6] : memref<32x32xbf16, #tpu.memory_space<vmem>>, vector<32x32xbf16>
    %cst = arith.constant dense<0.000000e+00> : vector<256x32xf32>
    %5 = tpu.matmul %3, %4, %cst {dimension_numbers = #tpu.dot_dimension_numbers<[1], [0], [0], [1], [0, 0, 1, 1], [], []>} : vector<256x32xbf16>, vector<32x32xbf16>, vector<256x32xf32> -> vector<256x32xf32>
    %6 = math.tanh %5 : vector<256x32xf32>
    %c0_7 = arith.constant 0 : index
    %c0_8 = arith.constant 0 : index
    %7 = vector.load %arg4[%c0_7, %c0_8] : memref<32x2xf32, #tpu.memory_space<vmem>>, vector<32x2xf32>
    %cst_9 = arith.constant dense<0.000000e+00> : vector<256x2xf32>
    %8 = tpu.matmul %6, %7, %cst_9 {dimension_numbers = #tpu.dot_dimension_numbers<[1], [0], [0], [1], [0, 0, 1, 1], [], []>} : vector<256x32xf32>, vector<32x2xf32>, vector<256x2xf32> -> vector<256x2xf32>
    %9 = vector.shape_cast %8 : vector<256x2xf32> to vector<16x16x2xf32>
    %cst_10 = arith.constant dense<0xFF800000> : vector<16x2xf32>
    %10 = vector.multi_reduction <maximumf>, %9, %cst_10 [1] : vector<16x16x2xf32> to vector<16x2xf32>
    %11 = vector.shape_cast %10 : vector<16x2xf32> to vector<16x1x2xf32>
    %12 = vector.broadcast %11 : vector<16x1x2xf32> to vector<16x16x2xf32>
    %13 = arith.subf %9, %12 : vector<16x16x2xf32>
    %14 = math.exp %13 : vector<16x16x2xf32>
    %cst_11 = arith.constant dense<0.000000e+00> : vector<16x2xf32>
    %15 = vector.multi_reduction <add>, %14, %cst_11 [1] : vector<16x16x2xf32> to vector<16x2xf32>
    %16 = vector.shape_cast %15 : vector<16x2xf32> to vector<16x1x2xf32>
    %17 = tpu.reciprocal %16 {approx = true} : vector<16x1x2xf32> -> vector<16x1x2xf32>
    %18 = vector.broadcast %17 : vector<16x1x2xf32> to vector<16x16x2xf32>
    %19 = arith.mulf %14, %18 : vector<16x16x2xf32>
    %c0_12 = arith.constant 0 : index
    %c0_13 = arith.constant 0 : index
    %c0_14 = arith.constant 0 : index
    %20 = vector.load %arg10[%c0_12, %c0_13, %c0_14] : memref<16x16x2xf32, #tpu.memory_space<vmem>>, vector<16x16x2xf32>
    tpu.vector_store %arg10[%c0_12, %c0_13, %c0_14], %19 {strides = array<i32>} : memref<16x16x2xf32, #tpu.memory_space<vmem>>, vector<16x16x2xf32>,
    %21 = vector.extract_strided_slice %19 {offsets = [0, 0, 0], sizes = [16, 16, 1], strides = [1, 1, 1]} : vector<16x16x2xf32> to vector<16x16x1xf32>
    %22 = vector.broadcast %21 : vector<16x16x1xf32> to vector<16x16x32xf32>
    %23 = arith.mulf %22, %2 : vector<16x16x32xf32>
    %cst_15 = arith.constant dense<0.000000e+00> : vector<16x32xf32>
    %24 = vector.multi_reduction <add>, %23, %cst_15 [1] : vector<16x16x32xf32> to vector<16x32xf32>
    %25 = vector.extract_strided_slice %19 {offsets = [0, 0, 1], sizes = [16, 16, 1], strides = [1, 1, 1]} : vector<16x16x2xf32> to vector<16x16x1xf32>
    %26 = vector.broadcast %25 : vector<16x16x1xf32> to vector<16x16x32xf32>
    %27 = arith.mulf %26, %2 : vector<16x16x32xf32>
    %cst_16 = arith.constant dense<0.000000e+00> : vector<16x32xf32>
    %28 = vector.multi_reduction <add>, %27, %cst_16 [1] : vector<16x16x32xf32> to vector<16x32xf32>
    %29 = tpu.concatenate %24, %28 in 0 : vector<16x32xf32>, vector<16x32xf32> -> vector<32x32xf32>
    %30 = arith.truncf %29 : vector<32x32xf32> to vector<32x32xbf16>
    %c0_17 = arith.constant 0 : index
    %c0_18 = arith.constant 0 : index
    %31 = vector.load %arg5[%c0_17, %c0_18] : memref<32x32xbf16, #tpu.memory_space<vmem>>, vector<32x32xbf16>
    %cst_19 = arith.constant dense<0.000000e+00> : vector<32x32xf32>
    %32 = tpu.matmul %30, %31, %cst_19 {dimension_numbers = #tpu.dot_dimension_numbers<[1], [0], [0], [1], [0, 0, 1, 1], [], []>} : vector<32x32xbf16>, vector<32x32xbf16>, vector<32x32xf32> -> vector<32x32xf32>
    %c0_20 = arith.constant 0 : index
    %c0_21 = arith.constant 0 : index
    %33 = vector.load %arg6[%c0_20, %c0_21] : memref<1x32xf32, #tpu.memory_space<vmem>>, vector<1x32xf32>
    %34 = vector.broadcast %33 : vector<1x32xf32> to vector<32x32xf32>
    %35 = arith.addf %32, %34 : vector<32x32xf32>
    %cst_22 = arith.constant 0.000000e+00 : f32
    %36 = vector.broadcast %cst_22 : f32 to vector<32x32xf32>
    %37 = arith.subf %36, %35 : vector<32x32xf32>
    %38 = math.exp %37 : vector<32x32xf32>
    %cst_23 = arith.constant 1.000000e+00 : f32
    %39 = vector.broadcast %cst_23 : f32 to vector<32x32xf32>
    %40 = arith.addf %39, %38 : vector<32x32xf32>
    %41 = tpu.reciprocal %40 {approx = true} : vector<32x32xf32> -> vector<32x32xf32>
    %c0_24 = arith.constant 0 : index
    %c0_25 = arith.constant 0 : index
    %42 = vector.load %arg2[%c0_24, %c0_25] : memref<16x32xf32, #tpu.memory_space<vmem>>, vector<16x32xf32>
    %43 = tpu.concatenate %42, %42 in 0 : vector<16x32xf32>, vector<16x32xf32> -> vector<32x32xf32>
    %44 = arith.addf %43, %41 : vector<32x32xf32>
    %cst_26 = arith.constant dense<0.000000e+00> : vector<32xf32>
    %45 = vector.multi_reduction <add>, %44, %cst_26 [1] : vector<32x32xf32> to vector<32xf32>
    %46 = vector.shape_cast %45 : vector<32xf32> to vector<32x1xf32>
    %cst_27 = arith.constant 3.200000e+01 : f32
    %47 = vector.broadcast %cst_27 : f32 to vector<32x1xf32>
    %48 = arith.divf %46, %47 : vector<32x1xf32>
    %49 = vector.broadcast %48 : vector<32x1xf32> to vector<32x32xf32>
    %50 = arith.subf %44, %49 : vector<32x32xf32>
    %51 = arith.mulf %50, %50 : vector<32x32xf32>
    %cst_28 = arith.constant dense<0.000000e+00> : vector<32xf32>
    %52 = vector.multi_reduction <add>, %51, %cst_28 [1] : vector<32x32xf32> to vector<32xf32>
    %53 = vector.shape_cast %52 : vector<32xf32> to vector<32x1xf32>
    %cst_29 = arith.constant 3.200000e+01 : f32
    %54 = vector.broadcast %cst_29 : f32 to vector<32x1xf32>
    %55 = arith.divf %53, %54 : vector<32x1xf32>
    %56 = vector.broadcast %48 : vector<32x1xf32> to vector<32x32xf32>
    %57 = arith.subf %44, %56 : vector<32x32xf32>
    %cst_30 = arith.constant 9.99999974E-6 : f32
    %58 = vector.broadcast %cst_30 : f32 to vector<32x1xf32>
    %59 = arith.addf %55, %58 : vector<32x1xf32>
    %60 = math.rsqrt %59 : vector<32x1xf32>
    %61 = vector.broadcast %60 : vector<32x1xf32> to vector<32x32xf32>
    %62 = arith.mulf %57, %61 : vector<32x32xf32>
    %c0_31 = arith.constant 0 : index
    %c0_32 = arith.constant 0 : index
    %63 = vector.load %arg7[%c0_31, %c0_32] : memref<1x32xf32, #tpu.memory_space<vmem>>, vector<1x32xf32>
    %64 = vector.broadcast %63 : vector<1x32xf32> to vector<32x32xf32>
    %65 = arith.mulf %62, %64 : vector<32x32xf32>
    %c0_33 = arith.constant 0 : index
    %c0_34 = arith.constant 0 : index
    %66 = vector.load %arg8[%c0_33, %c0_34] : memref<1x32xf32, #tpu.memory_space<vmem>>, vector<1x32xf32>
    %67 = vector.broadcast %66 : vector<1x32xf32> to vector<32x32xf32>
    %68 = arith.addf %65, %67 : vector<32x32xf32>
    %69 = vector.shape_cast %41 : vector<32x32xf32> to vector<2x16x32xf32>
    %c0_35 = arith.constant 0 : index
    %c0_36 = arith.constant 0 : index
    %c0_37 = arith.constant 0 : index
    %70 = vector.load %arg11[%c0_35, %c0_36, %c0_37] : memref<2x16x32xf32, #tpu.memory_space<vmem>>, vector<2x16x32xf32>
    tpu.vector_store %arg11[%c0_35, %c0_36, %c0_37], %69 {strides = array<i32>} : memref<2x16x32xf32, #tpu.memory_space<vmem>>, vector<2x16x32xf32>,
    %71 = vector.shape_cast %68 : vector<32x32xf32> to vector<2x16x32xf32>
    %c0_38 = arith.constant 0 : index
    %c0_39 = arith.constant 0 : index
    %c0_40 = arith.constant 0 : index
    %72 = vector.load %arg9[%c0_38, %c0_39, %c0_40] : memref<2x16x32xf32, #tpu.memory_space<vmem>>, vector<2x16x32xf32>
    tpu.vector_store %arg9[%c0_38, %c0_39, %c0_40], %71 {strides = array<i32>} : memref<2x16x32xf32, #tpu.memory_space<vmem>>, vector<2x16x32xf32>,
    return
  }
  func.func @transform_0(%arg0: i32) -> (i32, i32, i32) {
    %c0_i32 = arith.constant 0 : i32
    %c0_i32_0 = arith.constant 0 : i32
    %c0_i32_1 = arith.constant 0 : i32
    return %arg0, %c0_i32, %c0_i32_0 : i32, i32, i32
  }
  func.func @transform_1(%arg0: i32) -> (i32, i32) {
    %c0_i32 = arith.constant 0 : i32
    %c0_i32_0 = arith.constant 0 : i32
    return %arg0, %c0_i32 : i32, i32
  }
  func.func @transform_2(%arg0: i32) -> (i32, i32) {
    %c0_i32 = arith.constant 0 : i32
    %c0_i32_0 = arith.constant 0 : i32
    %c0_i32_1 = arith.constant 0 : i32
    return %c0_i32, %c0_i32_0 : i32, i32
  }
  func.func @transform_3(%arg0: i32) -> (i32, i32) {
    %c0_i32 = arith.constant 0 : i32
    %c0_i32_0 = arith.constant 0 : i32
    %c0_i32_1 = arith.constant 0 : i32
    return %c0_i32, %c0_i32_0 : i32, i32
  }
  func.func @transform_4(%arg0: i32) -> (i32, i32) {
    %c0_i32 = arith.constant 0 : i32
    %c0_i32_0 = arith.constant 0 : i32
    %c0_i32_1 = arith.constant 0 : i32
    return %c0_i32, %c0_i32_0 : i32, i32
  }
  func.func @transform_5(%arg0: i32) -> (i32, i32) {
    %c0_i32 = arith.constant 0 : i32
    %c0_i32_0 = arith.constant 0 : i32
    %c0_i32_1 = arith.constant 0 : i32
    return %c0_i32, %c0_i32_0 : i32, i32
  }
  func.func @transform_6(%arg0: i32) -> (i32, i32) {
    %c0_i32 = arith.constant 0 : i32
    %c0_i32_0 = arith.constant 0 : i32
    %c0_i32_1 = arith.constant 0 : i32
    return %c0_i32, %c0_i32_0 : i32, i32
  }
  func.func @transform_7(%arg0: i32) -> (i32, i32) {
    %c0_i32 = arith.constant 0 : i32
    %c0_i32_0 = arith.constant 0 : i32
    %c0_i32_1 = arith.constant 0 : i32
    return %c0_i32, %c0_i32_0 : i32, i32
  }
  func.func @transform_8(%arg0: i32) -> (i32, i32, i32) {
    %c0_i32 = arith.constant 0 : i32
    %c0_i32_0 = arith.constant 0 : i32
    %c0_i32_1 = arith.constant 0 : i32
    return %c0_i32, %arg0, %c0_i32_0 : i32, i32, i32
  }
  func.func @transform_9(%arg0: i32) -> (i32, i32, i32) {
    %c0_i32 = arith.constant 0 : i32
    %c0_i32_0 = arith.constant 0 : i32
    %c0_i32_1 = arith.constant 0 : i32
    return %arg0, %c0_i32, %c0_i32_0 : i32, i32, i32
  }
  func.func @transform_10(%arg0: i32) -> (i32, i32, i32) {
    %c0_i32 = arith.constant 0 : i32
    %c0_i32_0 = arith.constant 0 : i32
    %c0_i32_1 = arith.constant 0 : i32
    return %c0_i32, %arg0, %c0_i32_0 : i32, i32, i32
  }
}

</mosaic_0001>

<bundles_post_ra>
// kernel: tpu_custom_call.1
= control target key start
LH: loop header
LB: loop body
LE: loop exit
PB: predicated region body
PF: predicated region fallthrough
CT: control target
= control target key end

     0   :  { %16 = vsyncpa [#allocation3], 0  ;;  %s3441_s0 = inlined_call_operand.hbm [shape: f32[16,16,32], index: 0, kind: input, shape index: {}]   ;;  %s3442_s1 = inlined_call_operand.vmem [shape: f32[16,32], index: 1, kind: input, shape index: {}]   ;;  %s3443_s2 = inlined_call_operand.vmem [shape: bf16[32,32], index: 2, kind: input, shape index: {}]   ;;  %s3444_s3 = inlined_call_operand.vmem [shape: f32[32,2], index: 3, kind: input, shape index: {}]   ;;  %s3445_s4 = inlined_call_operand.hbm [shape: bf16[32,32], index: 4, kind: input, shape index: {}]   ;;  %s3446_s5 = inlined_call_operand.vmem [shape: f32[1,32], index: 5, kind: input, shape index: {}]   ;;  %s3447_s6 = inlined_call_operand.vmem [shape: f32[1,32], index: 6, kind: input, shape index: {}]   ;;  %s3448_s7 = inlined_call_operand.vmem [shape: f32[1,32], index: 7, kind: input, shape index: {}]   ;;  %s3449_s8 = inlined_call_operand.hbm [shape: f32[2,16,32], index: 8, kind: output, shape index: {0}]   ;;  %s3450_s9 = inlined_call_operand.vmem [shape: f32[16,16,2], index: 9, kind: output, shape index: {1}]   ;;  %s3451_s10 = inlined_call_operand.hbm [shape: f32[2,16,32], index: 10, kind: output, shape index: {2}]  }
   0x1   :  { %17 = vsyncpa [#allocation6], 0 }
   0x2   :  { %18 = vsyncpa [#allocation4], 0 }
   0x3   :  { %19 = vsyncpa [#allocation9], 0  ;;  %s24_s15 = sshll.u32 %s3441_s0, 4  ;;  %s2466_s16 = smov [#allocation2]   ;;  %s25_s15 = int_to_ptr.hbm [resolvable:$true] %s24_s15 }
   0x4   :  { %s26_s17 = sshll.u32 %s2466_s16, 4  ;;  %s43_s20 = sshll.u32 %s3445_s4, 4  ;;  %s27_s17 = int_to_ptr.vmem [resolvable:$true] %s26_s17  ;;  %s44_s20 = int_to_ptr.hbm [resolvable:$true] %s43_s20 }
   0x5   :  { %s2467_s21 = smov 128   ;;  %s2468_s22 = smov 8  }
   0x6   :  { %32 = dma.hbm_to_vmem [thread:$0]  %s25_s15, 4096, %s27_s17, [#allocation3], %s2467_s21, %s2467_s21, %s2468_s22  }
   0x7   :  { %s2469_s23 = smov [#allocation5]   ;;  %s2470_s25 = smov 64  }
   0x8   :  { %s45_s24 = sshll.u32 %s2469_s23, 4  ;;  %s2471_s0 = smov 4   ;;  %s46_s24 = int_to_ptr.vmem [resolvable:$true] %s45_s24 }
   0x9   :  { %51 = dma.hbm_to_vmem [thread:$0]  %s44_s20, 256, %s46_s24, [#allocation6], %s2470_s25, %s2470_s25, %s2471_s0  }
   0xa   :  { %2458 = dma.done.wait [#allocation3], 4096  }
   0xb   :  { %2459 = vsyncadd [#allocation3], 4294963200 }
   0xc   :  { %2460 = dma.done.wait [#allocation6], 256  }
   0xd   :  { %2461 = vsyncadd [#allocation6], 4294967040  ;;  %v2087_v0 = vld [vmem:[%s3443_s2 + $0x8] sm:$0xff]  ;;  %v67_v1 = vld [vmem:[#allocation2] sm:$0xff]  ;;  %vm227_vm0 = vcmask 261120   ;;  %vm610_vm1 = vcmask 15360  }
   0xe   :  { %v68_v2 = vld [vmem:[#allocation2 + $0x8] sm:$0xff]  ;;  %v99_v3 = vpack.c.bf16 %v67_v1, %v67_v1  ;;  %v85_v4 = vld [vmem:[#allocation2 + $0x90] sm:$0xff]  ;;  %v86_v5 = vld [vmem:[#allocation2 + $0x98] sm:$0xff]  ;;  %282 = vmatpush.bf16.msra.mxu0 %v2087_v0  ;;  %2090 = vmatpush.bf16.msra.mxu3 %v2087_v0  ;;  %vm1731_vm2 = vcmask 1041409   ;;  %vm1733_vm3 = vcmask 1042434   ;;  %vm1735_vm4 = vcmask 1043459  }
   0xf   :  { %v2086_v6 = vld [vmem:[%s3443_s2] sm:$0xff]  ;;  %v100_v7 = vpack.c.bf16 %v68_v2, %v68_v2  ;;  %v117_v8 = vpack.c.bf16 %v85_v4, %v85_v4  ;;  %v118_v9 = vpack.c.bf16 %v86_v5, %v86_v5  ;;  %v69_v16 = vld [vmem:[#allocation2 + $0x10] sm:$0xff]  ;;  %v70_v17 = vld [vmem:[#allocation2 + $0x18] sm:$0xff]  ;;  %vm1737_vm5 = vcmask 1044484   ;;  %s1999_s20 = sshll.u32 %s3451_s10, 4  ;;  %s1984_s27 = sshll.u32 %s3449_s8, 4  ;;  %s2000_s20 = int_to_ptr.hbm [resolvable:$true] %s1999_s20  ;;  %s1985_s27 = int_to_ptr.hbm [resolvable:$true] %s1984_s27 }
  0x10   :  { %v167_v10 = vunpack.c.l.b16 %v99_v3  ;;  %v87_v18 = vld [vmem:[#allocation2 + $0xa0] sm:$0xff]  ;;  %v88_v19 = vld [vmem:[#allocation2 + $0xa8] sm:$0xff]  ;;  %v101_v20 = vpack.c.bf16 %v69_v16, %v69_v16  ;;  %v102_v21 = vpack.c.bf16 %v70_v17, %v70_v17  ;;  %v89_v32 = vld [vmem:[#allocation2 + $0xb0] sm:$0xff]  ;;  %vm1739_vm6 = vcmask 1045509  }
  0x11   :  { %v168_v11 = vunpack.c.l.b16 %v100_v7  ;;  %v185_v12 = vunpack.c.l.b16 %v117_v8  ;;  %v186_v13 = vunpack.c.l.b16 %v118_v9  ;;  %v119_v22 = vpack.c.bf16 %v87_v18, %v87_v18  ;;  %v71_v30 = vld [vmem:[#allocation2 + $0x20] sm:$0xff]  ;;  %v72_v31 = vld [vmem:[#allocation2 + $0x28] sm:$0xff]  ;;  %v90_v33 = vld [vmem:[#allocation2 + $0xb8] sm:$0xff] }
  0x12   :  { %283 = vmatpush.bf16.msra.mxu0 %v2086_v6  ;;  %2091 = vmatpush.bf16.msra.mxu3 %v2086_v6  ;;  %v120_v23 = vpack.c.bf16 %v88_v19, %v88_v19  ;;  %v169_v24 = vunpack.c.l.b16 %v101_v20  ;;  %v170_v25 = vunpack.c.l.b16 %v102_v21  ;;  %v103_v34 = vpack.c.bf16 %v71_v30, %v71_v30  ;;  %v73_v44 = vld [vmem:[#allocation2 + $0x30] sm:$0xff]  ;;  %v74_v45 = vld [vmem:[#allocation2 + $0x38] sm:$0xff]  ;;  %v91_v46 = vld [vmem:[#allocation2 + $0xc0] sm:$0xff] }
  0x13   :  { %v199_v14 = vpack.c.b16 %v168_v11, %v167_v10  ;;  %v208_v15 = vpack.c.b16 %v186_v13, %v185_v12  ;;  %v187_v26 = vunpack.c.l.b16 %v119_v22  ;;  %v104_v35 = vpack.c.bf16 %v72_v31, %v72_v31  ;;  %v92_v47 = vld [vmem:[#allocation2 + $0xc8] sm:$0xff]  ;;  %v75_v58 = vld [vmem:[#allocation2 + $0x40] sm:$0xff]  ;;  %v93_v60 = vld [vmem:[#allocation2 + $0xd0] sm:$0xff] }
  0x14   :  { %v188_v27 = vunpack.c.l.b16 %v120_v23  ;;  %v200_v28 = vpack.c.b16 %v170_v25, %v169_v24  ;;  %v121_v36 = vpack.c.bf16 %v89_v32, %v89_v32  ;;  %v122_v37 = vpack.c.bf16 %v90_v33, %v90_v33  ;;  %v76_v59 = vld [vmem:[#allocation2 + $0x48] sm:$0xff]  ;;  %v94_v61 = vld [vmem:[#allocation2 + $0xd8] sm:$0xff]  ;;  %v77_v8 = vld [vmem:[#allocation2 + $0x50] sm:$0xff] }
  0x15   :  { %2028 = vmatmul.msk.bf16.vlgmr.msra.gmra.mxu0 %vm227_vm0, %v199_v14  ;;  %2037 = vmatmul.msk.bf16.vlgmr.msra.gmra.mxu3 %vm227_vm0, %v208_v15  ;;  %v171_v38 = vunpack.c.l.b16 %v103_v34  ;;  %v172_v39 = vunpack.c.l.b16 %v104_v35  ;;  %v105_v48 = vpack.c.bf16 %v73_v44, %v73_v44  ;;  %v106_v49 = vpack.c.bf16 %v74_v45, %v74_v45  ;;  %v78_v9 = vld [vmem:[#allocation2 + $0x58] sm:$0xff]  ;;  %v95_v10 = vld [vmem:[#allocation2 + $0xe0] sm:$0xff]  ;;  %v96_v11 = vld [vmem:[#allocation2 + $0xe8] sm:$0xff] }
  0x16   :  { %v209_v29 = vpack.c.b16 %v188_v27, %v187_v26  ;;  %v189_v40 = vunpack.c.l.b16 %v121_v36  ;;  %v190_v41 = vunpack.c.l.b16 %v122_v37  ;;  %v123_v50 = vpack.c.bf16 %v91_v46, %v91_v46  ;;  %v79_v22 = vld [vmem:[#allocation2 + $0x60] sm:$0xff]  ;;  %v80_v23 = vld [vmem:[#allocation2 + $0x68] sm:$0xff]  ;;  %v97_v24 = vld [vmem:[#allocation2 + $0xf0] sm:$0xff] }
  0x17   :  { %v201_v42 = vpack.c.b16 %v172_v39, %v171_v38  ;;  %v124_v51 = vpack.c.bf16 %v92_v47, %v92_v47  ;;  %v173_v52 = vunpack.c.l.b16 %v105_v48  ;;  %v174_v53 = vunpack.c.l.b16 %v106_v49  ;;  %v98_v25 = vld [vmem:[#allocation2 + $0xf8] sm:$0xff]  ;;  %v399_v37 = vld [vmem:[%s3444_s3 + $0x10] sm:$0xff]  ;;  %v398_v38 = vld [vmem:[%s3444_s3 + $0x8] sm:$0xff] }
  0x18   :  { %v210_v43 = vpack.c.b16 %v190_v41, %v189_v40  ;;  %v191_v54 = vunpack.c.l.b16 %v123_v50  ;;  %v107_v62 = vpack.c.bf16 %v75_v58, %v75_v58  ;;  %v108_v63 = vpack.c.bf16 %v76_v59, %v76_v59  ;;  %v400_v36 = vld [vmem:[%s3444_s3 + $0x18] sm:$0xff]  ;;  %v81_v39 = vld [vmem:[#allocation2 + $0x70] sm:$0xff]  ;;  %v397_v41 = vld [vmem:[%s3444_s3] sm:$0xff] }
  0x19   :  { %v192_v55 = vunpack.c.l.b16 %v124_v51  ;;  %v202_v56 = vpack.c.b16 %v174_v53, %v173_v52  ;;  %v125_v0 = vpack.c.bf16 %v93_v60, %v93_v60  ;;  %v126_v1 = vpack.c.bf16 %v94_v61, %v94_v61  ;;  %509 = vmatpush.msra.mxu1 %v400_v36  ;;  %2093 = vmatpush.msrb.mxu3 %v400_v36  ;;  %v82_v40 = vld [vmem:[#allocation2 + $0x78] sm:$0xff]  ;;  %v83_v47 = vld [vmem:[#allocation2 + $0x80] sm:$0xff]  ;;  %v84_v48 = vld [vmem:[#allocation2 + $0x88] sm:$0xff] }
  0x1a   :  { %v175_v2 = vunpack.c.l.b16 %v107_v62  ;;  %v176_v3 = vunpack.c.l.b16 %v108_v63  ;;  %v109_v12 = vpack.c.bf16 %v77_v8, %v77_v8  ;;  %v110_v13 = vpack.c.bf16 %v78_v9, %v78_v9  ;;  %2092 = vmatpush.msra.mxu2 %v400_v36 }
  0x1b   :  { %v211_v57 = vpack.c.b16 %v192_v55, %v191_v54  ;;  %v193_v4 = vunpack.c.l.b16 %v125_v0  ;;  %v194_v5 = vunpack.c.l.b16 %v126_v1  ;;  %v127_v14 = vpack.c.bf16 %v95_v10, %v95_v10  ;;  %510 = vmatpush.msra.mxu1 %v399_v37  ;;  %2095 = vmatpush.msrb.mxu3 %v399_v37 }
  0x1c   :  { %v203_v6 = vpack.c.b16 %v176_v3, %v175_v2  ;;  %v128_v15 = vpack.c.bf16 %v96_v11, %v96_v11  ;;  %v177_v16 = vunpack.c.l.b16 %v109_v12  ;;  %v178_v17 = vunpack.c.l.b16 %v110_v13  ;;  %2094 = vmatpush.msra.mxu2 %v399_v37 }
  0x1d   :  { %v212_v7 = vpack.c.b16 %v194_v5, %v193_v4  ;;  %v195_v18 = vunpack.c.l.b16 %v127_v14  ;;  %v111_v26 = vpack.c.bf16 %v79_v22, %v79_v22  ;;  %v112_v27 = vpack.c.bf16 %v80_v23, %v80_v23  ;;  %511 = vmatpush.msra.mxu1 %v398_v38  ;;  %2097 = vmatpush.msrb.mxu3 %v398_v38 }
  0x1e   :  { %v196_v19 = vunpack.c.l.b16 %v128_v15  ;;  %v204_v20 = vpack.c.b16 %v178_v17, %v177_v16  ;;  %2096 = vmatpush.msra.mxu2 %v398_v38  ;;  %v115_v49 = vpack.c.bf16 %v83_v47, %v83_v47  ;;  %v116_v50 = vpack.c.bf16 %v84_v48, %v84_v48 }
  0x1f   :  { %v179_v30 = vunpack.c.l.b16 %v111_v26  ;;  %v180_v31 = vunpack.c.l.b16 %v112_v27  ;;  %512 = vmatpush.msra.mxu1 %v397_v41  ;;  %2099 = vmatpush.msrb.mxu3 %v397_v41  ;;  %vm1741_vm7 = vcmask 1046534   ;;  %vm1743_vm8 = vcmask 1047559  }
  0x20   :  { %v213_v21 = vpack.c.b16 %v196_v19, %v195_v18  ;;  %2098 = vmatpush.msra.mxu2 %v397_v41  ;;  %v183_v51 = vunpack.c.l.b16 %v115_v49  ;;  %v184_v52 = vunpack.c.l.b16 %v116_v50 }
  0x21   :  { %v205_v34 = vpack.c.b16 %v180_v31, %v179_v30 }
  0x22   :  { %v207_v53 = vpack.c.b16 %v184_v52, %v183_v51 }
  0x25   :  { %2029 = vmatmul.msk.bf16.gmra.mxu0 %vm227_vm0, %v200_v28  ;;  %2038 = vmatmul.msk.bf16.gmra.mxu3 %vm227_vm0, %v209_v29  ;;  %v129_v28 = vpack.c.bf16 %v97_v24, %v97_v24  ;;  %v130_v29 = vpack.c.bf16 %v98_v25, %v98_v25 }
  0x27   :  { %v197_v32 = vunpack.c.l.b16 %v129_v28  ;;  %v198_v33 = vunpack.c.l.b16 %v130_v29 }
  0x29   :  { %v214_v35 = vpack.c.b16 %v198_v33, %v197_v32 }
  0x35   :  { %2030 = vmatmul.msk.bf16.gmra.mxu0 %vm227_vm0, %v201_v42  ;;  %2039 = vmatmul.msk.bf16.gmra.mxu3 %vm227_vm0, %v210_v43  ;;  %v113_v42 = vpack.c.bf16 %v81_v39, %v81_v39  ;;  %v114_v43 = vpack.c.bf16 %v82_v40, %v82_v40 }
  0x37   :  { %v181_v44 = vunpack.c.l.b16 %v113_v42  ;;  %v182_v45 = vunpack.c.l.b16 %v114_v43 }
  0x39   :  { %v206_v46 = vpack.c.b16 %v182_v45, %v181_v44 }
  0x45   :  { %2031 = vmatmul.msk.bf16.gmra.mxu0 %vm227_vm0, %v202_v56  ;;  %2040 = vmatmul.msk.bf16.gmra.mxu3 %vm227_vm0, %v211_v57 }
  0x55   :  { %2032 = vmatmul.msk.bf16.gmra.mxu0 %vm227_vm0, %v203_v6  ;;  %2041 = vmatmul.msk.bf16.gmra.mxu3 %vm227_vm0, %v212_v7 }
  0x65   :  { %2033 = vmatmul.msk.bf16.gmra.mxu0 %vm227_vm0, %v204_v20  ;;  %2042 = vmatmul.msk.bf16.gmra.mxu3 %vm227_vm0, %v213_v21 }
  0x75   :  { %2034 = vmatmul.msk.bf16.gmra.mxu0 %vm227_vm0, %v205_v34  ;;  %2043 = vmatmul.msk.bf16.gmra.mxu3 %vm227_vm0, %v214_v35 }
  0x85   :  { %2035 = vmatmul.msk.bf16.gmra.mxu0 %vm227_vm0, %v206_v46 }
  0x92   :  { %v285_v54 = vpop.f32.mrf.mxu0 }
  0x93   :  { %2144 = vtanh.f32 %v285_v54 }
  0x95   :  { %2036 = vmatmul.msk.bf16.gmra.mxu0 %vm227_vm0, %v207_v53 }
  0x98   :  { %v2575_v55 = vpop.f32.mrf.mxu3 }
  0x99   :  { %v2145_v56 = vpop.eup %2144 }
  0x9a   :  { %v287_v57 = vpop.f32.mrf.mxu0  ;;  %2044 = vmatmul.msk.f32.vlgmr.msra.gmra.mxu1 %vm227_vm0, %v2145_v56 }
  0x9b   :  { %2146 = vtanh.f32 %v287_v57 }
  0xa0   :  { %v2578_v58 = vpop.f32.mrf.mxu3 }
  0xa1   :  { %v2147_v59 = vpop.eup %2146 }
  0xa2   :  { %v290_v60 = vpop.f32.mrf.mxu0  ;;  %2045 = vmatmul.msk.f32.gmra.mxu1 %vm227_vm0, %v2147_v59 }
  0xa3   :  { %2148 = vtanh.f32 %v290_v60 }
  0xa8   :  { %v2581_v61 = vpop.f32.mrf.mxu3 }
  0xa9   :  { %v2149_v62 = vpop.eup %2148 }
  0xaa   :  { %v292_v63 = vpop.f32.mrf.mxu0  ;;  %2046 = vmatmul.msk.f32.gmra.mxu1 %vm227_vm0, %v2149_v62 }
  0xab   :  { %2150 = vtanh.f32 %v292_v63 }
  0xb0   :  { %v2584_v0 = vpop.f32.mrf.mxu3 }
  0xb1   :  { %v2151_v1 = vpop.eup %2150 }
  0xb2   :  { %v295_v2 = vpop.f32.mrf.mxu0  ;;  %2047 = vmatmul.msk.f32.gmra.mxu1 %vm227_vm0, %v2151_v1 }
  0xb3   :  { %2152 = vtanh.f32 %v295_v2 }
  0xb8   :  { %v2587_v3 = vpop.f32.mrf.mxu3 }
  0xb9   :  { %v2153_v4 = vpop.eup %2152 }
  0xba   :  { %v297_v5 = vpop.f32.mrf.mxu0  ;;  %2048 = vmatmul.msk.f32.gmra.mxu1 %vm227_vm0, %v2153_v4  ;;  %v2472_v4 = vmov 1  }
  0xbb   :  { %2154 = vtanh.f32 %v297_v5  ;;  %2112 = vset.pattern.permute.xlu0 %v2472_v4  ;;  %2111 = vset.pattern.permute.xlu2 %v2472_v4 }
  0xc0   :  { %v2590_v6 = vpop.f32.mrf.mxu3 }
  0xc1   :  { %v2155_v7 = vpop.eup %2154 }
  0xc2   :  { %v300_v8 = vpop.f32.mrf.mxu0  ;;  %2049 = vmatmul.msk.f32.gmra.mxu1 %vm227_vm0, %v2155_v7 }
  0xc3   :  { %2156 = vtanh.f32 %v300_v8 }
  0xc8   :  { %v2593_v9 = vpop.f32.mrf.mxu3 }
  0xc9   :  { %v2157_v10 = vpop.eup %2156 }
  0xca   :  { %v302_v11 = vpop.f32.mrf.mxu0  ;;  %2050 = vmatmul.msk.f32.gmra.mxu1 %vm227_vm0, %v2157_v10 }
  0xcb   :  { %2158 = vtanh.f32 %v302_v11 }
  0xd0   :  { %v2596_v12 = vpop.f32.mrf.mxu3 }
  0xd1   :  { %v2159_v13 = vpop.eup %2158 }
  0xd2   :  { %v305_v14 = vpop.f32.mrf.mxu0  ;;  %2051 = vmatmul.msk.f32.gmra.mxu1 %vm227_vm0, %v2159_v13 }
  0xd3   :  { %2160 = vtanh.f32 %v305_v14 }
  0xd8   :  { %v2599_v15 = vpop.f32.mrf.mxu3 }
  0xd9   :  { %v2161_v16 = vpop.eup %2160 }
  0xda   :  { %v307_v17 = vpop.f32.mrf.mxu0  ;;  %2052 = vmatmul.msk.f32.gmra.mxu1 %vm227_vm0, %v2161_v16 }
  0xdb   :  { %2162 = vtanh.f32 %v307_v17 }
  0xe0   :  { %v2602_v18 = vpop.f32.mrf.mxu3 }
  0xe1   :  { %v2163_v19 = vpop.eup %2162 }
  0xe2   :  { %v310_v20 = vpop.f32.mrf.mxu0  ;;  %2053 = vmatmul.msk.f32.gmra.mxu1 %vm227_vm0, %v2163_v19 }
  0xe3   :  { %2164 = vtanh.f32 %v310_v20 }
  0xe8   :  { %v2605_v21 = vpop.f32.mrf.mxu3 }
  0xe9   :  { %v2165_v22 = vpop.eup %2164 }
  0xea   :  { %v312_v23 = vpop.f32.mrf.mxu0  ;;  %2054 = vmatmul.msk.f32.gmra.mxu1 %vm227_vm0, %v2165_v22 }
  0xeb   :  { %2166 = vtanh.f32 %v312_v23 }
  0xf0   :  { %v2608_v24 = vpop.f32.mrf.mxu3 }
  0xf1   :  { %v2167_v25 = vpop.eup %2166 }
  0xf2   :  { %v315_v26 = vpop.f32.mrf.mxu0  ;;  %2055 = vmatmul.msk.f32.gmra.mxu1 %vm227_vm0, %v2167_v25 }
  0xf3   :  { %2168 = vtanh.f32 %v315_v26 }
  0xf8   :  { %v360_v27 = vpop.f32.mrf.mxu3 }
  0xf9   :  { %v2169_v28 = vpop.eup %2168  ;;  %2170 = vtanh.f32 %v360_v27 }
  0xfa   :  { %v317_v29 = vpop.f32.mrf.mxu0  ;;  %2056 = vmatmul.msk.f32.gmra.mxu1 %vm227_vm0, %v2169_v28 }
  0xfb   :  { %2172 = vtanh.f32 %v317_v29 }
  0xff   :  { %v2171_v30 = vpop.eup %2170 }
 0x100   :  { %v362_v31 = vpop.f32.mrf.mxu3  ;;  %2074 = vmatmul.msk.f32.vlgmr.msrb.gmra.mxu3 %vm227_vm0, %v2171_v30 }
 0x101   :  { %v2173_v32 = vpop.eup %2172  ;;  %2174 = vtanh.f32 %v362_v31 }
 0x102   :  { %v320_v33 = vpop.f32.mrf.mxu0  ;;  %2057 = vmatmul.msk.f32.gmra.mxu1 %vm227_vm0, %v2173_v32 }
 0x103   :  { %2176 = vtanh.f32 %v320_v33 }
 0x107   :  { %v2175_v34 = vpop.eup %2174 }
 0x108   :  { %2075 = vmatmul.msk.f32.gmra.mxu3 %vm227_vm0, %v2175_v34 }
 0x109   :  { %v2177_v35 = vpop.eup %2176 }
 0x10a   :  { %v322_v36 = vpop.f32.mrf.mxu0  ;;  %2058 = vmatmul.msk.f32.gmra.mxu1 %vm227_vm0, %v2177_v35  ;;  %v2473_v35 = vmov 0  }
 0x10b   :  { %2178 = vtanh.f32 %v322_v36  ;;  %2113 = vset.pattern.permute.xlu1 %v2473_v35 }
 0x111   :  { %v2179_v37 = vpop.eup %2178 }
 0x112   :  { %v325_v38 = vpop.f32.mrf.mxu0  ;;  %2059 = vmatmul.msk.f32.gmra.mxu1 %vm227_vm0, %v2179_v37 }
 0x113   :  { %2180 = vtanh.f32 %v325_v38 }
 0x117   :  { %v514_v39 = vpop.f32.mrf.mxu1 }
 0x118   :  { %v611_v43 = vsel %vm610_vm1, %v514_v39, -inf }
 0x119   :  { %v2181_v40 = vpop.eup %2180 }
 0x11a   :  { %v327_v41 = vpop.f32.mrf.mxu0  ;;  %2060 = vmatmul.msk.f32.gmra.mxu1 %vm227_vm0, %v2181_v40 }
 0x11b   :  { %2182 = vtanh.f32 %v327_v41 }
 0x11c   :  { %2184 = vtanh.f32 %v2575_v55 }
 0x11d   :  { %2186 = vtanh.f32 %v2578_v58 }
 0x11e   :  { %2188 = vtanh.f32 %v2581_v61 }
 0x11f   :  { %v517_v42 = vpop.f32.mrf.mxu1 }
 0x120   :  { %v612_v44 = vsel %vm610_vm1, %v517_v42, -inf }
 0x121   :  { %v2183_v45 = vpop.eup %2182  ;;  %v613_v46 = vmax.f32 %v611_v43, %v612_v44 }
 0x122   :  { %2061 = vmatmul.msk.f32.vlgmr.msra.gmra.mxu2 %vm227_vm0, %v2183_v45  ;;  %v2185_v51 = vpop.eup %2184 }
 0x123   :  { %v614_v47 = vrot.slane %v613_v46, 4  ;;  %v2187_v55 = vpop.eup %2186 }
 0x124   :  { %v2189_v10 = vpop.eup %2188 }
 0x125   :  { %v615_v48 = vmax.f32 %v613_v46, %v614_v47 }
 0x127   :  { %v616_v49 = vrot.slane %v615_v48, 2  ;;  %v520_v50 = vpop.f32.mrf.mxu1 }
 0x128   :  { %v620_v60 = vsel %vm610_vm1, %v520_v50, -inf }
 0x129   :  { %v617_v52 = vmax.f32 %v615_v48, %v616_v49 }
 0x12a   :  { %2062 = vmatmul.msk.f32.gmra.mxu2 %vm227_vm0, %v2185_v51 }
 0x12b   :  { %v618_v53 = vrot.slane %v617_v52, 1 }
 0x12d   :  { %v619_v54 = vmax.f32 %v617_v52, %v618_v53 }
 0x12f   :  { %v755_v56 = vsub.f32 %v514_v39, %v619_v54  ;;  %v756_v57 = vsub.f32 %v517_v42, %v619_v54  ;;  %v523_v59 = vpop.f32.mrf.mxu1 }
 0x130   :  { %v621_v62 = vsel %vm610_vm1, %v523_v59, -inf }
 0x131   :  { %v787_v63 = vmul.f32 1.442695, %v755_v56  ;;  %v789_v1 = vmul.f32 1.442695, %v756_v57  ;;  %v622_v2 = vmax.f32 %v620_v60, %v621_v62 }
 0x132   :  { %2063 = vmatmul.msk.f32.gmra.mxu2 %vm227_vm0, %v2187_v55 }
 0x133   :  { %2190 = vpow2.f32 %v787_v63  ;;  %v623_v58 = vrot.slane %v622_v2, 4 }
 0x134   :  { %2192 = vpow2.f32 %v789_v1 }
 0x135   :  { %v624_v5 = vmax.f32 %v622_v2, %v623_v58  ;;  %2194 = vtanh.f32 %v2584_v0 }
 0x136   :  { %2196 = vtanh.f32 %v2587_v3 }
 0x137   :  { %v625_v7 = vrot.slane %v624_v5, 2  ;;  %v526_v8 = vpop.f32.mrf.mxu1 }
 0x138   :  { %v629_v28 = vsel %vm610_vm1, %v526_v8, -inf }
 0x139   :  { %v2191_v11 = vpop.eup %2190  ;;  %v626_v13 = vmax.f32 %v624_v5, %v625_v7 }
 0x13a   :  { %v2193_v14 = vpop.eup %2192  ;;  %v851_v16 = vsel %vm610_vm1, %v2191_v11, 0.0  ;;  %2064 = vmatmul.msk.f32.gmra.mxu2 %vm227_vm0, %v2189_v10 }
 0x13b   :  { %v852_v61 = vsel %vm610_vm1, %v2193_v14, 0.0  ;;  %v627_v17 = vrot.slane %v626_v13, 1  ;;  %v2195_v30 = vpop.eup %2194 }
 0x13c   :  { %v853_v19 = vadd.f32 %v852_v61, %v851_v16  ;;  %v2197_v41 = vpop.eup %2196 }
 0x13d   :  { %v628_v20 = vmax.f32 %v626_v13, %v627_v17 }
 0x13e   :  { %v854_v22 = vrot.slane %v853_v19, 4 }
 0x13f   :  { %v757_v23 = vsub.f32 %v520_v50, %v628_v20  ;;  %v758_v25 = vsub.f32 %v523_v59, %v628_v20  ;;  %v529_v26 = vpop.f32.mrf.mxu1 }
 0x140   :  { %v855_v27 = vadd.f32 %v854_v22, %v853_v19  ;;  %v630_v29 = vsel %vm610_vm1, %v529_v26, -inf }
 0x141   :  { %v791_v31 = vmul.f32 1.442695, %v757_v23  ;;  %v793_v32 = vmul.f32 1.442695, %v758_v25  ;;  %v631_v33 = vmax.f32 %v629_v28, %v630_v29 }
 0x142   :  { %v856_v0 = vrot.slane %v855_v27, 2  ;;  %2065 = vmatmul.msk.f32.gmra.mxu2 %vm227_vm0, %v2195_v30 }
 0x143   :  { %2198 = vpow2.f32 %v791_v31  ;;  %v632_v34 = vrot.slane %v631_v33, 4 }
 0x144   :  { %2200 = vpow2.f32 %v793_v32  ;;  %v857_v36 = vadd.f32 %v856_v0, %v855_v27 }
 0x145   :  { %v633_v37 = vmax.f32 %v631_v33, %v632_v34 }
 0x146   :  { %v858_v38 = vrot.slane %v857_v36, 1 }
 0x147   :  { %v634_v39 = vrot.slane %v633_v37, 2  ;;  %v2639_v40 = vpop.f32.mrf.mxu1 }
 0x148   :  { %v859_v42 = vadd.f32 %v858_v38, %v857_v36  ;;  %v638_v57 = vsel %vm610_vm1, %v2639_v40, -inf }
 0x149   :  { %v2641_v43 = vpop.eup %2198  ;;  %v635_v3 = vmax.f32 %v633_v37, %v634_v39 }
 0x14a   :  { %v2643_v44 = vpop.eup %2200  ;;  %v860_v45 = vsel %vm610_vm1, %v2641_v43, 0.0  ;;  %2066 = vmatmul.msk.f32.gmra.mxu2 %vm227_vm0, %v2197_v41  ;;  %2202 = vrcp.f32 %v859_v42 }
 0x14b   :  { %2204 = vtanh.f32 %v2590_v6  ;;  %v861_v46 = vsel %vm610_vm1, %v2643_v44, 0.0  ;;  %v636_v47 = vrot.slane %v635_v3, 1 }
 0x14c   :  { %v862_v48 = vadd.f32 %v861_v46, %v860_v45  ;;  %2206 = vtanh.f32 %v2593_v9 }
 0x14d   :  { %v637_v49 = vmax.f32 %v635_v3, %v636_v47 }
 0x14e   :  { %v863_v50 = vrot.slane %v862_v48, 4 }
 0x14f   :  { %v759_v51 = vsub.f32 %v526_v8, %v637_v49  ;;  %v760_v52 = vsub.f32 %v529_v26, %v637_v49  ;;  %v535_v53 = vpop.f32.mrf.mxu1 }
 0x150   :  { %v2203_v54 = vpop.eup %2202  ;;  %v864_v56 = vadd.f32 %v863_v50, %v862_v48  ;;  %v639_v59 = vsel %vm610_vm1, %v535_v53, -inf }
 0x151   :  { %v2205_v60 = vpop.eup %2204  ;;  %v795_v62 = vmul.f32 1.442695, %v759_v51  ;;  %v797_v6 = vmul.f32 1.442695, %v760_v52  ;;  %v640_v55 = vmax.f32 %v638_v57, %v639_v59  ;;  %v2654_v63 = vmul.f32 %v2203_v54, %v2193_v14 }
 0x152   :  { %v865_v1 = vrot.slane %v864_v56, 2  ;;  %v2657_v2 = vmul.f32 %v2203_v54, %v2191_v11  ;;  %2067 = vmatmul.msk.f32.gmra.mxu2 %vm227_vm0, %v2205_v60  ;;  %v2207_v11 = vpop.eup %2206 }
 0x153   :  { %2208 = vpow2.f32 %v795_v62  ;;  %v641_v58 = vrot.slane %v640_v55, 4  ;;  %1416 = vperm.xlu0 %2112, %v2654_v63   ;;  %1044 = vst.msk [vmem:[%s3450_s9 + $0x8] sm:$0xff] %vm610_vm1, %v2654_v63 }
 0x154   :  { %2210 = vpow2.f32 %v797_v6  ;;  %1412 = vperm.xlu2 %2111, %v2657_v2   ;;  %1043 = vst.msk [vmem:[%s3450_s9] sm:$0xff] %vm610_vm1, %v2657_v2  ;;  %v866_v9 = vadd.f32 %v865_v1, %v864_v56 }
 0x155   :  { %v642_v5 = vmax.f32 %v640_v55, %v641_v58 }
 0x156   :  { %v867_v7 = vrot.slane %v866_v9, 1 }
 0x157   :  { %v643_v8 = vrot.slane %v642_v5, 2  ;;  %v2672_v10 = vpop.f32.mrf.mxu1 }
 0x158   :  { %v868_v13 = vadd.f32 %v867_v7, %v866_v9  ;;  %v647_v31 = vsel %vm610_vm1, %v2672_v10, -inf }
 0x159   :  { %v2674_v14 = vpop.eup %2208  ;;  %v644_v16 = vmax.f32 %v642_v5, %v643_v8 }
 0x15a   :  { %v2676_v61 = vpop.eup %2210  ;;  %v869_v17 = vsel %vm610_vm1, %v2674_v14, 0.0  ;;  %2068 = vmatmul.msk.f32.gmra.mxu2 %vm227_vm0, %v2207_v11  ;;  %2212 = vrcp.f32 %v868_v13 }
 0x15b   :  { %2214 = vtanh.f32 %v2596_v12  ;;  %v870_v19 = vsel %vm610_vm1, %v2676_v61, 0.0  ;;  %v645_v20 = vrot.slane %v644_v16, 1 }
 0x15c   :  { %v871_v22 = vadd.f32 %v870_v19, %v869_v17  ;;  %2216 = vtanh.f32 %v2599_v15 }
 0x15d   :  { %v646_v23 = vmax.f32 %v644_v16, %v645_v20 }
 0x15e   :  { %v872_v25 = vrot.slane %v871_v22, 4 }
 0x15f   :  { %v761_v26 = vsub.f32 %v2639_v40, %v646_v23  ;;  %v762_v27 = vsub.f32 %v535_v53, %v646_v23  ;;  %v541_v28 = vpop.f32.mrf.mxu1 }
 0x160   :  { %v2213_v29 = vpop.eup %2212  ;;  %v873_v30 = vadd.f32 %v872_v25, %v871_v22  ;;  %v648_v32 = vsel %vm610_vm1, %v541_v28, -inf }
 0x161   :  { %v2215_v33 = vpop.eup %2214  ;;  %v799_v12 = vmul.f32 1.442695, %v761_v26  ;;  %v801_v0 = vmul.f32 1.442695, %v762_v27  ;;  %v649_v34 = vmax.f32 %v647_v31, %v648_v32  ;;  %v1014_v36 = vmul.f32 %v2213_v29, %v2643_v44 }
 0x162   :  { %v874_v37 = vrot.slane %v873_v30, 2  ;;  %v1013_v38 = vmul.f32 %v2213_v29, %v2641_v43  ;;  %2069 = vmatmul.msk.f32.gmra.mxu2 %vm227_vm0, %v2215_v33  ;;  %v2217_v3 = vpop.eup %2216 }
 0x163   :  { %2218 = vpow2.f32 %v799_v12  ;;  %v650_v39 = vrot.slane %v649_v34, 4  ;;  %1424 = vperm.xlu2 %2111, %v1014_v36   ;;  %1046 = vst.msk [vmem:[%s3450_s9 + $0x18] sm:$0xff] %vm610_vm1, %v1014_v36 }
 0x164   :  { %2220 = vpow2.f32 %v801_v0  ;;  %1087 = vperm.xlu1 %2113, %v1013_v38   ;;  %1045 = vst.msk [vmem:[%s3450_s9 + $0x10] sm:$0xff] %vm610_vm1, %v1013_v38  ;;  %v875_v15 = vadd.f32 %v874_v37, %v873_v30 }
 0x165   :  { %v651_v40 = vmax.f32 %v649_v34, %v650_v39 }
 0x166   :  { %v876_v41 = vrot.slane %v875_v15, 1 }
 0x167   :  { %v652_v42 = vrot.slane %v651_v40, 2  ;;  %v2700_v43 = vpop.f32.mrf.mxu1 }
 0x168   :  { %v877_v44 = vadd.f32 %v876_v41, %v875_v15  ;;  %v656_v62 = vsel %vm610_vm1, %v2700_v43, -inf }
 0x169   :  { %v2702_v45 = vpop.eup %2218  ;;  %v653_v46 = vmax.f32 %v651_v40, %v652_v42 }
 0x16a   :  { %v2704_v47 = vpop.eup %2220  ;;  %v878_v48 = vsel %vm610_vm1, %v2702_v45, 0.0  ;;  %2070 = vmatmul.msk.f32.gmra.mxu2 %vm227_vm0, %v2217_v3  ;;  %2222 = vrcp.f32 %v877_v44 }
 0x16b   :  { %2224 = vtanh.f32 %v2602_v18  ;;  %v879_v49 = vsel %vm610_vm1, %v2704_v47, 0.0  ;;  %v654_v50 = vrot.slane %v653_v46, 1  ;;  %2115 = vset.pattern.permute.xlu2 %v2473_v35 }
 0x16c   :  { %v880_v51 = vadd.f32 %v879_v49, %v878_v48  ;;  %1092 = vperm.xlu1 %2113, %v1014_v36   ;;  %2226 = vtanh.f32 %v2605_v21 }
 0x16d   :  { %v655_v52 = vmax.f32 %v653_v46, %v654_v50 }
 0x16e   :  { %v881_v53 = vrot.slane %v880_v51, 4 }
 0x16f   :  { %v763_v54 = vsub.f32 %v2672_v10, %v655_v52  ;;  %v764_v56 = vsub.f32 %v541_v28, %v655_v52  ;;  %v547_v57 = vpop.f32.mrf.mxu1 }
 0x170   :  { %v2223_v59 = vpop.eup %2222  ;;  %v882_v60 = vadd.f32 %v881_v53, %v880_v51  ;;  %v657_v18 = vsel %vm610_vm1, %v547_v57, -inf }
 0x171   :  { %v2225_v6 = vpop.eup %2224  ;;  %v803_v55 = vmul.f32 1.442695, %v763_v54  ;;  %v805_v1 = vmul.f32 1.442695, %v764_v56  ;;  %v658_v58 = vmax.f32 %v656_v62, %v657_v18  ;;  %v1016_v9 = vmul.f32 %v2223_v59, %v2676_v61 }
 0x172   :  { %v883_v5 = vrot.slane %v882_v60, 2  ;;  %v1015_v7 = vmul.f32 %v2223_v59, %v2674_v14  ;;  %2071 = vmatmul.msk.f32.gmra.mxu2 %vm227_vm0, %v2225_v6  ;;  %v2227_v16 = vpop.eup %2226 }
 0x173   :  { %2228 = vpow2.f32 %v803_v55  ;;  %v659_v8 = vrot.slane %v658_v58, 4  ;;  %1432 = vperm.xlu0 %2112, %v1016_v9   ;;  %1048 = vst.msk [vmem:[%s3450_s9 + $0x28] sm:$0xff] %vm610_vm1, %v1016_v9 }
 0x174   :  { %2230 = vpow2.f32 %v805_v1  ;;  %2114 = vset.pattern.permute.xlu1 %v2472_v4  ;;  %1097 = vperm.xlu2 %2115, %v1015_v7   ;;  %1047 = vst.msk [vmem:[%s3450_s9 + $0x20] sm:$0xff] %vm610_vm1, %v1015_v7  ;;  %v884_v21 = vadd.f32 %v883_v5, %v882_v60 }
 0x175   :  { %v660_v10 = vmax.f32 %v658_v58, %v659_v8  ;;  %1420 = vperm.xlu1 %2114, %v1013_v38  }
 0x176   :  { %v885_v11 = vrot.slane %v884_v21, 1 }
 0x177   :  { %v661_v13 = vrot.slane %v660_v10, 2  ;;  %v2730_v14 = vpop.f32.mrf.mxu1 }
 0x178   :  { %v886_v61 = vadd.f32 %v885_v11, %v884_v21  ;;  %v665_v12 = vsel %vm610_vm1, %v2730_v14, -inf }
 0x179   :  { %v2732_v17 = vpop.eup %2228  ;;  %v662_v19 = vmax.f32 %v660_v10, %v661_v13 }
 0x17a   :  { %v2734_v20 = vpop.eup %2230  ;;  %v887_v22 = vsel %vm610_vm1, %v2732_v17, 0.0  ;;  %2072 = vmatmul.msk.f32.gmra.mxu2 %vm227_vm0, %v2227_v16  ;;  %2232 = vrcp.f32 %v886_v61 }
 0x17b   :  { %2234 = vtanh.f32 %v2608_v24  ;;  %v888_v23 = vsel %vm610_vm1, %v2734_v20, 0.0  ;;  %v663_v25 = vrot.slane %v662_v19, 1 }
 0x17c   :  { %v889_v26 = vadd.f32 %v888_v23, %v887_v22  ;;  %1102 = vperm.xlu2 %2115, %v1016_v9  }
 0x17d   :  { %v664_v27 = vmax.f32 %v662_v19, %v663_v25  ;;  %2117 = vset.pattern.permute.xlu1 %v2473_v35 }
 0x17e   :  { %v890_v28 = vrot.slane %v889_v26, 4 }
 0x17f   :  { %v765_v29 = vsub.f32 %v2700_v43, %v664_v27  ;;  %v766_v30 = vsub.f32 %v547_v57, %v664_v27  ;;  %v553_v31 = vpop.f32.mrf.mxu1 }
 0x180   :  { %v2233_v32 = vpop.eup %2232  ;;  %v891_v33 = vadd.f32 %v890_v28, %v889_v26  ;;  %v666_v24 = vsel %vm610_vm1, %v553_v31, -inf }
 0x181   :  { %v2235_v0 = vpop.eup %2234  ;;  %v807_v34 = vmul.f32 1.442695, %v765_v29  ;;  %v809_v36 = vmul.f32 1.442695, %v766_v30  ;;  %v667_v37 = vmax.f32 %v665_v12, %v666_v24  ;;  %v1018_v38 = vmul.f32 %v2233_v32, %v2704_v47 }
 0x182   :  { %v892_v39 = vrot.slane %v891_v33, 2  ;;  %v2749_v15 = vmul.f32 %v2233_v32, %v2702_v45  ;;  %2073 = vmatmul.msk.f32.gmra.mxu2 %vm227_vm0, %v2235_v0 }
 0x183   :  { %2236 = vpow2.f32 %v807_v34  ;;  %v668_v40 = vrot.slane %v667_v37, 4  ;;  %1112 = vperm.xlu1 %2117, %v1018_v38   ;;  %1050 = vst.msk [vmem:[%s3450_s9 + $0x38] sm:$0xff] %vm610_vm1, %v1018_v38  ;;  %v2756_v41 = vpop.f32.mrf.mxu3 }
 0x184   :  { %2238 = vpow2.f32 %v809_v36  ;;  %2116 = vset.pattern.permute.xlu2 %v2472_v4  ;;  %1436 = vperm.xlu0 %2112, %v2749_v15   ;;  %1049 = vst.msk [vmem:[%s3450_s9 + $0x30] sm:$0xff] %vm610_vm1, %v2749_v15  ;;  %v893_v42 = vadd.f32 %v892_v39, %v891_v33  ;;  %v746_v51 = vsel %vm610_vm1, %v2756_v41, -inf }
 0x185   :  { %v669_v43 = vmax.f32 %v667_v37, %v668_v40  ;;  %1428 = vperm.xlu2 %2116, %v1015_v7  }
 0x186   :  { %v894_v3 = vrot.slane %v893_v42, 1 }
 0x187   :  { %v670_v44 = vrot.slane %v669_v43, 2  ;;  %v2765_v45 = vpop.f32.mrf.mxu1 }
 0x188   :  { %v895_v46 = vadd.f32 %v894_v3, %v893_v42  ;;  %v674_v5 = vsel %vm610_vm1, %v2765_v45, -inf }
 0x189   :  { %v2767_v47 = vpop.eup %2236  ;;  %v671_v48 = vmax.f32 %v669_v43, %v670_v44 }
 0x18a   :  { %v2769_v49 = vpop.eup %2238  ;;  %v896_v50 = vsel %vm610_vm1, %v2767_v47, 0.0  ;;  %2240 = vrcp.f32 %v895_v46 }
 0x18b   :  { %v897_v52 = vsel %vm610_vm1, %v2769_v49, 0.0  ;;  %v672_v53 = vrot.slane %v671_v48, 1  ;;  %2118 = vset.pattern.permute.xlu1 %v2472_v4  ;;  %v607_v54 = vpop.f32.mrf.mxu3 }
 0x18c   :  { %v898_v56 = vadd.f32 %v897_v52, %v896_v50  ;;  %v747_v57 = vsel %vm610_vm1, %v607_v54, -inf  ;;  %1440 = vperm.xlu1 %2118, %v1018_v38  }
 0x18d   :  { %v673_v59 = vmax.f32 %v671_v48, %v672_v53  ;;  %v748_v60 = vmax.f32 %v746_v51, %v747_v57  ;;  %2119 = vset.pattern.permute.xlu2 %v2473_v35 }
 0x18e   :  { %v899_v62 = vrot.slane %v898_v56, 4 }
 0x18f   :  { %v767_v18 = vsub.f32 %v2730_v14, %v673_v59  ;;  %v768_v6 = vsub.f32 %v553_v31, %v673_v59  ;;  %v749_v55 = vrot.slane %v748_v60, 4  ;;  %v559_v1 = vpop.f32.mrf.mxu1 }
 0x190   :  { %v2241_v58 = vpop.eup %2240  ;;  %v900_v9 = vadd.f32 %v899_v62, %v898_v56  ;;  %v675_v7 = vsel %vm610_vm1, %v559_v1, -inf }
 0x191   :  { %v811_v8 = vmul.f32 1.442695, %v767_v18  ;;  %v813_v21 = vmul.f32 1.442695, %v768_v6  ;;  %v750_v10 = vmax.f32 %v748_v60, %v749_v55  ;;  %v676_v11 = vmax.f32 %v674_v5, %v675_v7 }
 0x192   :  { %v901_v13 = vrot.slane %v900_v9, 2  ;;  %v1019_v16 = vmul.f32 %v2241_v58, %v2732_v17  ;;  %v2786_v61 = vmul.f32 %v2241_v58, %v2734_v20 }
 0x193   :  { %2242 = vpow2.f32 %v811_v8  ;;  %v751_v14 = vrot.slane %v750_v10, 2  ;;  %v677_v19 = vrot.slane %v676_v11, 4 }
 0x194   :  { %2244 = vpow2.f32 %v813_v21  ;;  %1117 = vperm.xlu2 %2119, %v1019_v16   ;;  %1051 = vst.msk [vmem:[%s3450_s9 + $0x40] sm:$0xff] %vm610_vm1, %v1019_v16  ;;  %1444 = vperm.xlu1 %2118, %v1019_v16   ;;  %v902_v22 = vadd.f32 %v901_v13, %v900_v9 }
 0x195   :  { %v752_v23 = vmax.f32 %v750_v10, %v751_v14  ;;  %v678_v25 = vmax.f32 %v676_v11, %v677_v19  ;;  %1052 = vst.msk [vmem:[%s3450_s9 + $0x48] sm:$0xff] %vm610_vm1, %v2786_v61 }
 0x196   :  { %v903_v17 = vrot.slane %v902_v22, 1 }
 0x197   :  { %v753_v20 = vrot.slane %v752_v23, 1  ;;  %v679_v26 = vrot.slane %v678_v25, 2  ;;  %v562_v51 = vpop.f32.mrf.mxu1 }
 0x198   :  { %v904_v27 = vadd.f32 %v903_v17, %v902_v22 }
 0x199   :  { %v2797_v28 = vpop.eup %2242  ;;  %v754_v29 = vmax.f32 %v752_v23, %v753_v20  ;;  %v680_v30 = vmax.f32 %v678_v25, %v679_v26 }
 0x19a   :  { %v2799_v31 = vpop.eup %2244  ;;  %v905_v32 = vsel %vm610_vm1, %v2797_v28, 0.0  ;;  %2246 = vrcp.f32 %v904_v27 }
 0x19b   :  { %v906_v33 = vsel %vm610_vm1, %v2799_v31, 0.0  ;;  %v785_v12 = vsub.f32 %v2756_v41, %v754_v29  ;;  %v786_v24 = vsub.f32 %v607_v54, %v754_v29  ;;  %v681_v0 = vrot.slane %v680_v30, 1 }
 0x19c   :  { %v907_v34 = vadd.f32 %v906_v33, %v905_v32  ;;  %2120 = vset.pattern.permute.xlu2 %v2472_v4  ;;  %2123 = vset.pattern.permute.xlu1 %v2473_v35  ;;  %v683_v54 = vsel %vm610_vm1, %v562_v51, -inf }
 0x19d   :  { %v847_v36 = vmul.f32 1.442695, %v785_v12  ;;  %v849_v37 = vmul.f32 1.442695, %v786_v24  ;;  %v682_v38 = vmax.f32 %v680_v30, %v681_v0  ;;  %1448 = vperm.xlu2 %2120, %v2786_v61  }
 0x19e   :  { %v908_v39 = vrot.slane %v907_v34, 4 }
 0x19f   :  { %2248 = vpow2.f32 %v847_v36  ;;  %v769_v40 = vsub.f32 %v2765_v45, %v682_v38  ;;  %v770_v42 = vsub.f32 %v559_v1, %v682_v38 }
 0x1a0   :  { %v2247_v43 = vpop.eup %2246  ;;  %v909_v3 = vadd.f32 %v908_v39, %v907_v34  ;;  %2250 = vpow2.f32 %v849_v37 }
 0x1a1   :  { %v815_v41 = vmul.f32 1.442695, %v769_v40  ;;  %v817_v44 = vmul.f32 1.442695, %v770_v42  ;;  %v2811_v46 = vmul.f32 %v2247_v43, %v2769_v49  ;;  %v1021_v48 = vmul.f32 %v2247_v43, %v2767_v47 }
 0x1a2   :  { %v910_v50 = vrot.slane %v909_v3, 2 }
 0x1a3   :  { %2252 = vpow2.f32 %v815_v41  ;;  %1456 = vperm.xlu0 %2112, %v2811_v46   ;;  %1054 = vst.msk [vmem:[%s3450_s9 + $0x58] sm:$0xff] %vm610_vm1, %v2811_v46 }
 0x1a4   :  { %2254 = vpow2.f32 %v817_v44  ;;  %1053 = vst.msk [vmem:[%s3450_s9 + $0x50] sm:$0xff] %vm610_vm1, %v1021_v48  ;;  %v911_v45 = vadd.f32 %v910_v50, %v909_v3 }
 0x1a5   :  { %v2824_v49 = vpop.eup %2248  ;;  %2121 = vset.pattern.permute.xlu2 %v2473_v35  ;;  %v565_v47 = vpop.f32.mrf.mxu2 }
 0x1a6   :  { %v2251_v52 = vpop.eup %2250  ;;  %v986_v53 = vsel %vm610_vm1, %v2824_v49, 0.0  ;;  %1127 = vperm.xlu2 %2121, %v1021_v48   ;;  %v684_v56 = vsel %vm610_vm1, %v565_v47, -inf  ;;  %v912_v57 = vrot.slane %v911_v45, 1 }
 0x1a7   :  { %v987_v59 = vsel %vm610_vm1, %v2251_v52, 0.0  ;;  %v685_v60 = vmax.f32 %v683_v54, %v684_v56 }
 0x1a8   :  { %v988_v62 = vadd.f32 %v987_v59, %v986_v53  ;;  %v913_v18 = vadd.f32 %v912_v57, %v911_v45 }
 0x1a9   :  { %v2832_v6 = vpop.eup %2252  ;;  %v686_v55 = vrot.slane %v685_v60, 4 }
 0x1aa   :  { %v2255_v1 = vpop.eup %2254  ;;  %v989_v58 = vrot.slane %v988_v62, 4  ;;  %v914_v9 = vsel %vm610_vm1, %v2832_v6, 0.0  ;;  %2256 = vrcp.f32 %v913_v18 }
 0x1ab   :  { %v915_v5 = vsel %vm610_vm1, %v2255_v1, 0.0  ;;  %v687_v7 = vmax.f32 %v685_v60, %v686_v55 }
 0x1ac   :  { %v990_v8 = vadd.f32 %v989_v58, %v988_v62  ;;  %v916_v21 = vadd.f32 %v915_v5, %v914_v9  ;;  %v2884_v62 = vld [vmem:[#allocation2] sm:$0xff] }
 0x1ad   :  { %v688_v10 = vrot.slane %v687_v7, 2  ;;  %v2837_v11 = vpop.f32.mrf.mxu2 }
 0x1ae   :  { %v991_v13 = vrot.slane %v990_v8, 2  ;;  %v917_v16 = vrot.slane %v916_v21, 4  ;;  %2122 = vset.pattern.permute.xlu2 %v2472_v4  ;;  %v692_v12 = vsel %vm610_vm1, %v2837_v11, -inf  ;;  %v1413_v44 = vpop.permute.xlu2 %1412 }
 0x1af   :  { %v689_v14 = vmax.f32 %v687_v7, %v688_v10  ;;  %1452 = vperm.xlu2 %2122, %v1021_v48   ;;  %v1539_v18 = vmul.f32 %v2884_v62, %v1413_v44 }
 0x1b0   :  { %v2257_v19 = vpop.eup %2256  ;;  %v918_v22 = vadd.f32 %v917_v16, %v916_v21  ;;  %v992_v23 = vadd.f32 %v991_v13, %v990_v8  ;;  %v2903_v8 = vld [vmem:[#allocation2 + $0x8] sm:$0xff] }
 0x1b1   :  { %v690_v25 = vrot.slane %v689_v14, 1  ;;  %v2841_v17 = vmul.f32 %v2257_v19, %v2799_v31  ;;  %v2844_v20 = vmul.f32 %v2257_v19, %v2797_v28  ;;  %v1571_v19 = vsel %vm227_vm0, %v1539_v18, 0.0 }
 0x1b2   :  { %v919_v26 = vrot.slane %v918_v22, 2  ;;  %v993_v27 = vrot.slane %v992_v23, 1 }
 0x1b3   :  { %v691_v29 = vmax.f32 %v689_v14, %v690_v25  ;;  %1142 = vperm.xlu1 %2123, %v2841_v17   ;;  %1056 = vst.msk [vmem:[%s3450_s9 + $0x68] sm:$0xff] %vm610_vm1, %v2841_v17 }
 0x1b4   :  { %v994_v30 = vadd.f32 %v993_v27, %v992_v23  ;;  %v920_v32 = vadd.f32 %v919_v26, %v918_v22  ;;  %1055 = vst.msk [vmem:[%s3450_s9 + $0x60] sm:$0xff] %vm610_vm1, %v2844_v20 }
 0x1b5   :  { %v771_v28 = vsub.f32 %v562_v51, %v691_v29  ;;  %v772_v31 = vsub.f32 %v565_v47, %v691_v29  ;;  %v571_v33 = vpop.f32.mrf.mxu2 }
 0x1b6   :  { %v693_v24 = vsel %vm610_vm1, %v571_v33, -inf  ;;  %2258 = vrcp.f32 %v994_v30  ;;  %v921_v0 = vrot.slane %v920_v32, 1 }
 0x1b7   :  { %v819_v34 = vmul.f32 1.442695, %v771_v28  ;;  %v821_v36 = vmul.f32 1.442695, %v772_v31  ;;  %v694_v37 = vmax.f32 %v692_v12, %v693_v24  ;;  %2124 = vset.pattern.permute.xlu2 %v2473_v35 }
 0x1b8   :  { %v922_v38 = vadd.f32 %v921_v0, %v920_v32 }
 0x1b9   :  { %2260 = vpow2.f32 %v819_v34  ;;  %v695_v39 = vrot.slane %v694_v37, 4 }
 0x1ba   :  { %2262 = vpow2.f32 %v821_v36 }
 0x1bb   :  { %v696_v40 = vmax.f32 %v694_v37, %v695_v39  ;;  %2264 = vrcp.f32 %v922_v38 }
 0x1bc   :  { %v2259_v42 = vpop.eup %2258 }
 0x1bd   :  { %v697_v43 = vrot.slane %v696_v40, 2  ;;  %v2861_v3 = vpop.f32.mrf.mxu2  ;;  %v2863_v41 = vmul.f32 %v2259_v42, %v2251_v52  ;;  %v2899_v5 = vpop.permute.xlu2 %1424  ;;  %v2913_v26 = vmul.f32 %v2259_v42, %v2824_v49 }
 0x1be   :  { %v701_v7 = vsel %vm610_vm1, %v2861_v3, -inf }
 0x1bf   :  { %v2865_v48 = vpop.eup %2260  ;;  %v698_v50 = vmax.f32 %v696_v40, %v697_v43  ;;  %1074 = vst.msk [vmem:[%s3450_s9 + $0xf8] sm:$0xff] %vm610_vm1, %v2863_v41  ;;  %1232 = vperm.xlu1 %2123, %v2863_v41   ;;  %v2332_v43 = vld [vmem:[#allocation2 + $0x20] sm:$0xff] }
 0x1c0   :  { %v2873_v51 = vpop.eup %2262  ;;  %v923_v45 = vsel %vm610_vm1, %v2865_v48, 0.0  ;;  %1073 = vst.msk [vmem:[%s3450_s9 + $0xf0] sm:$0xff] %vm610_vm1, %v2913_v26 }
 0x1c1   :  { %v2265_v47 = vpop.eup %2264  ;;  %v924_v52 = vsel %vm610_vm1, %v2873_v51, 0.0  ;;  %v699_v53 = vrot.slane %v698_v50, 1 }
 0x1c2   :  { %v925_v54 = vadd.f32 %v924_v52, %v923_v45  ;;  %v2879_v56 = vmul.f32 %v2265_v47, %v2255_v1  ;;  %v2882_v57 = vmul.f32 %v2265_v47, %v2832_v6 }
 0x1c3   :  { %v700_v59 = vmax.f32 %v698_v50, %v699_v53 }
 0x1c4   :  { %v926_v60 = vrot.slane %v925_v54, 4  ;;  %1152 = vperm.xlu2 %2124, %v2879_v56   ;;  %1058 = vst.msk [vmem:[%s3450_s9 + $0x78] sm:$0xff] %vm610_vm1, %v2879_v56 }
 0x1c5   :  { %v773_v55 = vsub.f32 %v2837_v11, %v700_v59  ;;  %v774_v1 = vsub.f32 %v571_v33, %v700_v59  ;;  %v1417_v58 = vpop.permute.xlu0 %1416  ;;  %v577_v6 = vpop.f32.mrf.mxu2  ;;  %1057 = vst.msk [vmem:[%s3450_s9 + $0x70] sm:$0xff] %vm610_vm1, %v2882_v57 }
 0x1c6   :  { %v927_v9 = vadd.f32 %v926_v60, %v925_v54  ;;  %v1540_v21 = vmul.f32 %v2903_v8, %v1417_v58  ;;  %v702_v10 = vsel %vm610_vm1, %v577_v6, -inf }
 0x1c7   :  { %v823_v11 = vmul.f32 1.442695, %v773_v55  ;;  %v825_v13 = vmul.f32 1.442695, %v774_v1  ;;  %v703_v16 = vmax.f32 %v701_v7, %v702_v10  ;;  %1147 = vperm.xlu1 %2123, %v2882_v57   ;;  %v2333_v55 = vld [vmem:[#allocation2 + $0x28] sm:$0xff] }
 0x1c8   :  { %v928_v14 = vrot.slane %v927_v9, 2  ;;  %v1572_v22 = vsel %vm227_vm0, %v1540_v21, 0.0 }
 0x1c9   :  { %2266 = vpow2.f32 %v823_v11  ;;  %v2910_v23 = vadd.f32 %v1572_v22, %v1571_v19  ;;  %v704_v25 = vrot.slane %v703_v16, 4 }
 0x1ca   :  { %2268 = vpow2.f32 %v825_v13  ;;  %v929_v27 = vadd.f32 %v928_v14, %v927_v9 }
 0x1cb   :  { %v705_v29 = vmax.f32 %v703_v16, %v704_v25  ;;  %v2334_v16 = vld [vmem:[#allocation2 + $0x10] sm:$0xff] }
 0x1cc   :  { %v930_v30 = vrot.slane %v929_v27, 1 }
 0x1cd   :  { %v706_v32 = vrot.slane %v705_v29, 2  ;;  %v2920_v28 = vpop.f32.mrf.mxu2 }
 0x1ce   :  { %v1098_v31 = vpop.permute.xlu2 %1097  ;;  %v931_v33 = vadd.f32 %v930_v30, %v929_v27  ;;  %v710_v18 = vsel %vm610_vm1, %v2920_v28, -inf  ;;  %v1574_v30 = vrot.slane %v2910_v23, 4 }
 0x1cf   :  { %v2922_v12 = vpop.eup %2266  ;;  %v707_v24 = vmax.f32 %v705_v29, %v706_v32  ;;  %v1239_v44 = vmul.f32 %v2332_v43, %v1098_v31  ;;  %v2335_v32 = vld [vmem:[#allocation2 + $0x18] sm:$0xff] }
 0x1d0   :  { %v2924_v49 = vpop.eup %2268  ;;  %v932_v0 = vsel %vm610_vm1, %v2922_v12, 0.0  ;;  %2270 = vrcp.f32 %v931_v33 }
 0x1d1   :  { %v933_v34 = vsel %vm610_vm1, %v2924_v49, 0.0  ;;  %v708_v36 = vrot.slane %v707_v24, 1  ;;  %v1285_v7 = vsel %vm227_vm0, %v1239_v44, 0.0 }
 0x1d2   :  { %v934_v37 = vadd.f32 %v933_v34, %v932_v0 }
 0x1d3   :  { %v709_v38 = vmax.f32 %v707_v24, %v708_v36 }
 0x1d4   :  { %v935_v39 = vrot.slane %v934_v37, 4 }
 0x1d5   :  { %v775_v40 = vsub.f32 %v2861_v3, %v709_v38  ;;  %v776_v42 = vsub.f32 %v577_v6, %v709_v38  ;;  %v2931_v50 = vpop.f32.mrf.mxu2  ;;  %v1542_v38 = vmul.f32 %v2335_v32, %v2899_v5 }
 0x1d6   :  { %v2271_v45 = vpop.eup %2270  ;;  %v936_v47 = vadd.f32 %v935_v39, %v934_v37  ;;  %v1088_v52 = vpop.permute.xlu1 %1087  ;;  %v711_v54 = vsel %vm610_vm1, %v2931_v50, -inf }
 0x1d7   :  { %v1103_v53 = vpop.permute.xlu2 %1102  ;;  %v827_v59 = vmul.f32 1.442695, %v775_v40  ;;  %v829_v60 = vmul.f32 1.442695, %v776_v42  ;;  %v712_v58 = vmax.f32 %v710_v18, %v711_v54  ;;  %v1028_v6 = vmul.f32 %v2271_v45, %v2873_v51 }
 0x1d8   :  { %v1240_v1 = vmul.f32 %v2333_v55, %v1103_v53  ;;  %v937_v3 = vrot.slane %v936_v47, 2  ;;  %v1027_v9 = vmul.f32 %v2271_v45, %v2865_v48  ;;  %v1237_v14 = vmul.f32 %v2334_v16, %v1088_v52 }
 0x1d9   :  { %2272 = vpow2.f32 %v827_v59  ;;  %v713_v11 = vrot.slane %v712_v58, 4  ;;  %1162 = vperm.xlu2 %2124, %v1028_v6   ;;  %1060 = vst.msk [vmem:[%s3450_s9 + $0x88] sm:$0xff] %vm610_vm1, %v1028_v6  ;;  %v1575_v45 = vadd.f32 %v1574_v30, %v2910_v23  ;;  %v1581_v5 = vsel %vm227_vm0, %v1542_v38, 0.0 }
 0x1da   :  { %v1286_v21 = vsel %vm227_vm0, %v1240_v1, 0.0  ;;  %2274 = vpow2.f32 %v829_v60  ;;  %1157 = vperm.xlu1 %2123, %v1027_v9   ;;  %v938_v13 = vadd.f32 %v937_v3, %v936_v47  ;;  %1059 = vst.msk [vmem:[%s3450_s9 + $0x80] sm:$0xff] %vm610_vm1, %v1027_v9  ;;  %v1276_v36 = vsel %vm227_vm0, %v1237_v14, 0.0 }
 0x1db   :  { %v2941_v10 = vadd.f32 %v1286_v21, %v1285_v7  ;;  %v714_v48 = vmax.f32 %v712_v58, %v713_v11  ;;  %v1576_v58 = vrot.slane %v1575_v45, 2 }
 0x1dc   :  { %v939_v51 = vrot.slane %v938_v13, 1 }
 0x1dd   :  { %v2951_v19 = vpop.f32.mrf.mxu2  ;;  %v715_v22 = vrot.slane %v714_v48, 2 }
 0x1de   :  { %v1093_v25 = vpop.permute.xlu1 %1092  ;;  %v940_v27 = vadd.f32 %v939_v51, %v938_v13  ;;  %v719_v23 = vsel %vm610_vm1, %v2951_v19, -inf }
 0x1df   :  { %v2953_v29 = vpop.eup %2272  ;;  %v1238_v31 = vmul.f32 %v2335_v32, %v1093_v25  ;;  %v716_v0 = vmax.f32 %v714_v48, %v715_v22  ;;  %v1429_v44 = vpop.permute.xlu2 %1428 }
 0x1e0   :  { %v2956_v33 = vpop.eup %2274  ;;  %v941_v24 = vsel %vm610_vm1, %v2953_v29, 0.0  ;;  %2276 = vrcp.f32 %v940_v27  ;;  %v1543_v53 = vmul.f32 %v2332_v43, %v1429_v44 }
 0x1e1   :  { %v942_v34 = vsel %vm610_vm1, %v2956_v33, 0.0  ;;  %v1277_v37 = vsel %vm227_vm0, %v1238_v31, 0.0  ;;  %v717_v40 = vrot.slane %v716_v0, 1  ;;  %2126 = vset.pattern.permute.xlu2 %v2472_v4 }
 0x1e2   :  { %v943_v39 = vadd.f32 %v942_v34, %v941_v24  ;;  %v2965_v42 = vadd.f32 %v1277_v37, %v1276_v36  ;;  %2125 = vset.pattern.permute.xlu1 %v2472_v4  ;;  %1480 = vperm.xlu2 %2126, %v1028_v6   ;;  %v1589_v48 = vsel %vm227_vm0, %v1543_v53, 0.0 }
 0x1e3   :  { %1476 = vperm.xlu1 %2125, %v1027_v9   ;;  %v718_v52 = vmax.f32 %v716_v0, %v717_v40 }
 0x1e4   :  { %v944_v47 = vrot.slane %v943_v39, 4 }
 0x1e5   :  { %v1433_v54 = vpop.permute.xlu0 %1432  ;;  %v2970_v59 = vpop.f32.mrf.mxu2  ;;  %v777_v18 = vsub.f32 %v2920_v28, %v718_v52  ;;  %v778_v1 = vsub.f32 %v2931_v50, %v718_v52 }
 0x1e6   :  { %v945_v60 = vadd.f32 %v944_v47, %v943_v39  ;;  %v2277_v3 = vpop.eup %2276  ;;  %v1544_v6 = vmul.f32 %v2333_v55, %v1433_v54  ;;  %v720_v43 = vsel %vm610_vm1, %v2970_v59, -inf }
 0x1e7   :  { %v1421_v9 = vpop.permute.xlu1 %1420  ;;  %v831_v21 = vmul.f32 1.442695, %v777_v18  ;;  %v833_v11 = vmul.f32 1.442695, %v778_v1  ;;  %v721_v51 = vmax.f32 %v719_v23, %v720_v43  ;;  %v2982_v50 = vmul.f32 %v2277_v3, %v2922_v12 }
 0x1e8   :  { %v946_v7 = vrot.slane %v945_v60, 2  ;;  %v1541_v13 = vmul.f32 %v2334_v16, %v1421_v9  ;;  %v1590_v28 = vsel %vm227_vm0, %v1544_v6, 0.0  ;;  %v1030_v22 = vmul.f32 %v2277_v3, %v2924_v49 }
 0x1e9   :  { %2278 = vpow2.f32 %v831_v21  ;;  %v1591_v14 = vadd.f32 %v1590_v28, %v1589_v48  ;;  %v722_v27 = vrot.slane %v721_v51, 4  ;;  %1484 = vperm.xlu0 %2112, %v2982_v50   ;;  %1061 = vst.msk [vmem:[%s3450_s9 + $0x90] sm:$0xff] %vm610_vm1, %v2982_v50  ;;  %v1577_v16 = vadd.f32 %v1576_v58, %v1575_v45 }
 0x1ea   :  { %v1580_v55 = vsel %vm227_vm0, %v1541_v13, 0.0  ;;  %2280 = vpow2.f32 %v833_v11  ;;  %1062 = vst.msk [vmem:[%s3450_s9 + $0x98] sm:$0xff] %vm610_vm1, %v1030_v22  ;;  %2129 = vset.pattern.permute.xlu2 %v2473_v35  ;;  %v947_v49 = vadd.f32 %v946_v7, %v945_v60 }
 0x1eb   :  { %v1582_v25 = vadd.f32 %v1581_v5, %v1580_v55  ;;  %2127 = vset.pattern.permute.xlu1 %v2473_v35  ;;  %v1592_v12 = vrot.slane %v1591_v14, 4  ;;  %v723_v32 = vmax.f32 %v721_v51, %v722_v27  ;;  %v1578_v44 = vrot.slane %v1577_v16, 1 }
 0x1ec   :  { %1172 = vperm.xlu1 %2127, %v1030_v22   ;;  %v948_v0 = vrot.slane %v947_v49, 1 }
 0x1ed   :  { %v1583_v30 = vrot.slane %v1582_v25, 4  ;;  %v2998_v31 = vpop.f32.mrf.mxu2  ;;  %v1593_v24 = vadd.f32 %v1592_v12, %v1591_v14  ;;  %v724_v36 = vrot.slane %v723_v32, 2  ;;  %v1579_v3 = vadd.f32 %v1578_v44, %v1577_v16 }
 0x1ee   :  { %v949_v39 = vadd.f32 %v948_v0, %v947_v49  ;;  %v3008_v1 = vpop.permute.xlu2 %1117  ;;  %v728_v21 = vsel %vm610_vm1, %v2998_v31, -inf }
 0x1ef   :  { %v1584_v34 = vadd.f32 %v1583_v30, %v1582_v25  ;;  %v3000_v37 = vpop.eup %2278  ;;  %v1594_v38 = vrot.slane %v1593_v24, 2  ;;  %v725_v45 = vmax.f32 %v723_v32, %v724_v36 }
 0x1f0   :  { %v3002_v40 = vpop.eup %2280  ;;  %v950_v47 = vsel %vm610_vm1, %v3000_v37, 0.0  ;;  %2282 = vrcp.f32 %v949_v39 }
 0x1f1   :  { %v1585_v52 = vrot.slane %v1584_v34, 2  ;;  %v951_v53 = vsel %vm610_vm1, %v3002_v40, 0.0  ;;  %v1595_v54 = vadd.f32 %v1594_v38, %v1593_v24  ;;  %v726_v18 = vrot.slane %v725_v45, 1 }
 0x1f2   :  { %v952_v5 = vadd.f32 %v951_v53, %v950_v47  ;;  %v3043_v47 = vld [vmem:[#allocation2 + $0x38] sm:$0xff] }
 0x1f3   :  { %v1586_v60 = vadd.f32 %v1585_v52, %v1584_v34  ;;  %v727_v6 = vmax.f32 %v725_v45, %v726_v18  ;;  %v1596_v7 = vrot.slane %v1595_v54, 1  ;;  %v3033_v34 = vld [vmem:[#allocation2 + $0x30] sm:$0xff] }
 0x1f4   :  { %2128 = vset.pattern.permute.xlu1 %v2472_v4  ;;  %v953_v58 = vrot.slane %v952_v5, 4 }
 0x1f5   :  { %v1587_v23 = vrot.slane %v1586_v60, 1  ;;  %1488 = vperm.xlu1 %2128, %v1030_v22   ;;  %v3011_v9 = vpop.permute.xlu1 %1112  ;;  %v3013_v43 = vpop.f32.mrf.mxu2  ;;  %v779_v28 = vsub.f32 %v2951_v19, %v727_v6  ;;  %v780_v51 = vsub.f32 %v2970_v59, %v727_v6  ;;  %v1597_v49 = vadd.f32 %v1596_v7, %v1595_v54  ;;  %v3056_v7 = vld [vmem:[#allocation2 + $0x48] sm:$0xff] }
 0x1f6   :  { %v729_v11 = vsel %vm610_vm1, %v3013_v43, -inf  ;;  %v954_v13 = vadd.f32 %v953_v58, %v952_v5  ;;  %v2283_v14 = vpop.eup %2282  ;;  %v1437_v16 = vpop.permute.xlu0 %1436 }
 0x1f7   :  { %v1588_v48 = vadd.f32 %v1587_v23, %v1586_v60  ;;  %v730_v55 = vmax.f32 %v728_v21, %v729_v11  ;;  %v835_v27 = vmul.f32 1.442695, %v779_v28  ;;  %v837_v12 = vmul.f32 1.442695, %v780_v51  ;;  %v1449_v36 = vpop.permute.xlu2 %1448 }
 0x1f8   :  { %v955_v22 = vrot.slane %v954_v13, 2  ;;  %v1031_v32 = vmul.f32 %v2283_v14, %v2953_v29  ;;  %v3024_v24 = vmul.f32 %v2283_v14, %v2956_v33  ;;  %v1545_v29 = vmul.f32 %v3033_v34, %v1437_v16 }
 0x1f9   :  { %v1770_v25 = vsel %vm1731_vm2, %v1588_v48, %v1579_v3  ;;  %v731_v30 = vrot.slane %v730_v55, 4  ;;  %2284 = vpow2.f32 %v835_v27  ;;  %v1548_v21 = vmul.f32 %v3056_v7, %v1449_v36 }
 0x1fa   :  { %v956_v19 = vadd.f32 %v955_v22, %v954_v13  ;;  %2286 = vpow2.f32 %v837_v12  ;;  %1177 = vperm.xlu2 %2129, %v1031_v32   ;;  %1063 = vst.msk [vmem:[%s3450_s9 + $0xa0] sm:$0xff] %vm610_vm1, %v1031_v32  ;;  %v3031_v0 = vsel %vm1733_vm3, %v1597_v49, %v1770_v25  ;;  %v1598_v5 = vsel %vm227_vm0, %v1545_v29, 0.0 }
 0x1fb   :  { %v732_v59 = vmax.f32 %v730_v55, %v731_v30  ;;  %1064 = vst.msk [vmem:[%s3450_s9 + $0xa8] sm:$0xff] %vm610_vm1, %v3024_v24  ;;  %v1608_v12 = vsel %vm227_vm0, %v1548_v21, 0.0  ;;  %v3071_v30 = vld [vmem:[#allocation2 + $0x40] sm:$0xff] }
 0x1fc   :  { %v957_v38 = vrot.slane %v956_v19, 1 }
 0x1fd   :  { %1492 = vperm.xlu1 %2128, %v1031_v32   ;;  %v3036_v33 = vpop.f32.mrf.mxu2  ;;  %v733_v39 = vrot.slane %v732_v59, 2 }
 0x1fe   :  { %v1441_v44 = vpop.permute.xlu1 %1440  ;;  %v958_v45 = vadd.f32 %v957_v38, %v956_v19  ;;  %v737_v49 = vsel %vm610_vm1, %v3036_v33, -inf }
 0x1ff   :  { %v1546_v52 = vmul.f32 %v3043_v47, %v1441_v44  ;;  %v734_v53 = vmax.f32 %v732_v59, %v733_v39  ;;  %v3046_v54 = vpop.eup %2284 }
 0x200   :  { %2288 = vrcp.f32 %v958_v45  ;;  %v3050_v18 = vpop.eup %2286  ;;  %v959_v3 = vsel %vm610_vm1, %v3046_v54, 0.0  ;;  %v3069_v16 = vpop.permute.xlu2 %1127 }
 0x201   :  { %v1599_v60 = vsel %vm227_vm0, %v1546_v52, 0.0  ;;  %v735_v58 = vrot.slane %v734_v53, 1  ;;  %v960_v6 = vsel %vm610_vm1, %v3050_v18, 0.0 }
 0x202   :  { %v1600_v23 = vadd.f32 %v1599_v60, %v1598_v5  ;;  %v961_v11 = vadd.f32 %v960_v6, %v959_v3  ;;  %2130 = vset.pattern.permute.xlu2 %v2472_v4 }
 0x203   :  { %v736_v13 = vmax.f32 %v734_v53, %v735_v58  ;;  %1496 = vperm.xlu2 %2130, %v3024_v24  }
 0x204   :  { %v1601_v48 = vrot.slane %v1600_v23, 4  ;;  %v962_v51 = vrot.slane %v961_v11, 4 }
 0x205   :  { %v3061_v28 = vpop.f32.mrf.mxu2  ;;  %2131 = vset.pattern.permute.xlu1 %v2473_v35  ;;  %v781_v14 = vsub.f32 %v2998_v31, %v736_v13  ;;  %v782_v55 = vsub.f32 %v3013_v43, %v736_v13 }
 0x206   :  { %v1602_v22 = vadd.f32 %v1601_v48, %v1600_v23  ;;  %v1445_v25 = vpop.permute.xlu1 %1444  ;;  %v2289_v27 = vpop.eup %2288  ;;  %v738_v19 = vsel %vm610_vm1, %v3061_v28, -inf  ;;  %v963_v31 = vadd.f32 %v962_v51, %v961_v11 }
 0x207   :  { %v1547_v32 = vmul.f32 %v3071_v30, %v1445_v25  ;;  %v839_v59 = vmul.f32 1.442695, %v781_v14  ;;  %v841_v43 = vmul.f32 1.442695, %v782_v55  ;;  %v739_v38 = vmax.f32 %v737_v49, %v738_v19 }
 0x208   :  { %v1603_v29 = vrot.slane %v1602_v22, 2  ;;  %v1034_v39 = vmul.f32 %v2289_v27, %v3002_v40  ;;  %v1033_v44 = vmul.f32 %v2289_v27, %v3000_v37  ;;  %v964_v52 = vrot.slane %v963_v31, 2 }
 0x209   :  { %v1607_v36 = vsel %vm227_vm0, %v1547_v32, 0.0  ;;  %2290 = vpow2.f32 %v839_v59  ;;  %v740_v5 = vrot.slane %v739_v38, 4  ;;  %v1453_v25 = vpop.permute.xlu2 %1452 }
 0x20a   :  { %v1604_v45 = vadd.f32 %v1603_v29, %v1602_v22  ;;  %v1609_v53 = vadd.f32 %v1608_v12, %v1607_v36  ;;  %2292 = vpow2.f32 %v841_v43  ;;  %1504 = vperm.xlu0 %2112, %v1034_v39   ;;  %1066 = vst.msk [vmem:[%s3450_s9 + $0xb8] sm:$0xff] %vm610_vm1, %v1034_v39  ;;  %1187 = vperm.xlu1 %2131, %v1033_v44  }
 0x20b   :  { %1065 = vst.msk [vmem:[%s3450_s9 + $0xb0] sm:$0xff] %vm610_vm1, %v1033_v44  ;;  %v965_v37 = vadd.f32 %v964_v52, %v963_v31  ;;  %v741_v40 = vmax.f32 %v739_v38, %v740_v5  ;;  %2132 = vset.pattern.permute.xlu2 %v2473_v35  ;;  %v3098_v31 = vld [vmem:[#allocation2 + $0x50] sm:$0xff]  ;;  %v3102_v38 = vld [vmem:[#allocation2 + $0x58] sm:$0xff] }
 0x20c   :  { %v1605_v60 = vrot.slane %v1604_v45, 1  ;;  %v1610_v3 = vrot.slane %v1609_v53, 4  ;;  %1192 = vperm.xlu2 %2132, %v1034_v39   ;;  %v1549_v59 = vmul.f32 %v3098_v31, %v1453_v25 }
 0x20d   :  { %v966_v6 = vrot.slane %v965_v37, 1  ;;  %v742_v21 = vrot.slane %v741_v40, 2 }
 0x20e   :  { %v1606_v58 = vadd.f32 %v1605_v60, %v1604_v45  ;;  %v1611_v23 = vadd.f32 %v1610_v3, %v1609_v53  ;;  %v1616_v60 = vsel %vm227_vm0, %v1549_v59, 0.0 }
 0x20f   :  { %v3088_v11 = vpop.eup %2290  ;;  %v967_v48 = vadd.f32 %v966_v6, %v965_v37  ;;  %v743_v22 = vmax.f32 %v741_v40, %v742_v21 }
 0x210   :  { %v1612_v13 = vrot.slane %v1611_v23, 2  ;;  %v1772_v51 = vsel %vm1735_vm4, %v1606_v58, %v3031_v0  ;;  %v3092_v14 = vpop.eup %2292  ;;  %v968_v55 = vsel %vm610_vm1, %v3088_v11, 0.0 }
 0x211   :  { %v969_v27 = vsel %vm610_vm1, %v3092_v14, 0.0  ;;  %2294 = vrcp.f32 %v967_v48  ;;  %v744_v32 = vrot.slane %v743_v22, 1 }
 0x212   :  { %v1613_v12 = vadd.f32 %v1612_v13, %v1611_v23  ;;  %v970_v49 = vadd.f32 %v969_v27, %v968_v55 }
 0x213   :  { %v745_v43 = vmax.f32 %v743_v22, %v744_v32 }
 0x214   :  { %v1614_v19 = vrot.slane %v1613_v12, 1  ;;  %v971_v0 = vrot.slane %v970_v49, 4  ;;  %2133 = vset.pattern.permute.xlu2 %v2472_v4 }
 0x215   :  { %v1457_v29 = vpop.permute.xlu0 %1456  ;;  %v783_v45 = vsub.f32 %v3036_v33, %v745_v43  ;;  %v784_v53 = vsub.f32 %v3061_v28, %v745_v43  ;;  %1500 = vperm.xlu2 %2133, %v1033_v44  }
 0x216   :  { %v1615_v36 = vadd.f32 %v1614_v19, %v1613_v12  ;;  %v1550_v39 = vmul.f32 %v3102_v38, %v1457_v29  ;;  %v972_v52 = vadd.f32 %v971_v0, %v970_v49 }
 0x217   :  { %v2295_v5 = vpop.eup %2294  ;;  %v843_v58 = vmul.f32 1.442695, %v783_v45  ;;  %v845_v23 = vmul.f32 1.442695, %v784_v53 }
 0x218   :  { %v1617_v3 = vsel %vm227_vm0, %v1550_v39, 0.0  ;;  %v1773_v37 = vsel %vm1737_vm5, %v1615_v36, %v1772_v51  ;;  %v973_v40 = vrot.slane %v972_v52, 2  ;;  %v1036_v21 = vmul.f32 %v2295_v5, %v3050_v18 }
 0x219   :  { %v1618_v6 = vadd.f32 %v1617_v3, %v1616_v60  ;;  %v3112_v13 = vmul.f32 %v2295_v5, %v3046_v54  ;;  %2296 = vpow2.f32 %v843_v58  ;;  %v3151_v3 = vld [vmem:[#allocation2 + $0x78] sm:$0xff]  ;;  %v3156_v58 = vld [vmem:[#allocation2 + $0x70] sm:$0xff] }
 0x21a   :  { %v974_v28 = vadd.f32 %v973_v40, %v972_v52  ;;  %2298 = vpow2.f32 %v845_v23  ;;  %1202 = vperm.xlu1 %2131, %v1036_v21   ;;  %1068 = vst.msk [vmem:[%s3450_s9 + $0xc8] sm:$0xff] %vm610_vm1, %v1036_v21 }
 0x21b   :  { %v1619_v33 = vrot.slane %v1618_v6, 4  ;;  %1508 = vperm.xlu0 %2112, %v3112_v13   ;;  %1067 = vst.msk [vmem:[%s3450_s9 + $0xc0] sm:$0xff] %vm610_vm1, %v3112_v13 }
 0x21c   :  { %v975_v54 = vrot.slane %v974_v28, 1 }
 0x21d   :  { %v1620_v44 = vadd.f32 %v1619_v33, %v1618_v6  ;;  %2136 = vset.pattern.permute.xlu2 %v2473_v35 }
 0x21e   :  { %v976_v48 = vadd.f32 %v975_v54, %v974_v28  ;;  %v1153_v5 = vpop.permute.xlu2 %1152  ;;  %v3188_v54 = vld [vmem:[#allocation2 + $0x80] sm:$0xff] }
 0x21f   :  { %v1621_v18 = vrot.slane %v1620_v44, 2  ;;  %v2297_v51 = vpop.eup %2296 }
 0x220   :  { %2300 = vrcp.f32 %v976_v48  ;;  %v2299_v22 = vpop.eup %2298  ;;  %v977_v25 = vsel %vm610_vm1, %v2297_v51, 0.0 }
 0x221   :  { %v1622_v55 = vadd.f32 %v1621_v18, %v1620_v44  ;;  %v978_v27 = vsel %vm610_vm1, %v2299_v22, 0.0 }
 0x222   :  { %v979_v49 = vadd.f32 %v978_v27, %v977_v25  ;;  %2134 = vset.pattern.permute.xlu1 %v2472_v4 }
 0x223   :  { %v1623_v12 = vrot.slane %v1622_v55, 1  ;;  %1460 = vperm.xlu0 %2112, %v2844_v20   ;;  %1512 = vperm.xlu1 %2134, %v1036_v21  }
 0x224   :  { %v980_v19 = vrot.slane %v979_v49, 4 }
 0x225   :  { %v1624_v32 = vadd.f32 %v1623_v12, %v1622_v55  ;;  %v3134_v39 = vpop.permute.xlu1 %1142 }
 0x226   :  { %v2301_v59 = vpop.eup %2300  ;;  %v981_v43 = vadd.f32 %v980_v19, %v979_v49  ;;  %v3202_v49 = vld [vmem:[#allocation2 + $0x98] sm:$0xff] }
 0x227   :  { %v3130_v0 = vsel %vm1739_vm6, %v1624_v32, %v1773_v37  ;;  %v1038_v29 = vmul.f32 %v2301_v59, %v3092_v14  ;;  %v1037_v36 = vmul.f32 %v2301_v59, %v3088_v11  ;;  %v1250_v37 = vmul.f32 %v3151_v3, %v1153_v5  ;;  %v3213_v5 = vld [vmem:[#allocation2 + $0xa0] sm:$0xff] }
 0x228   :  { %v982_v52 = vrot.slane %v981_v43, 2 }
 0x229   :  { %1212 = vperm.xlu2 %2136, %v1038_v29   ;;  %1070 = vst.msk [vmem:[%s3450_s9 + $0xd8] sm:$0xff] %vm610_vm1, %v1038_v29 }
 0x22a   :  { %1069 = vst.msk [vmem:[%s3450_s9 + $0xd0] sm:$0xff] %vm610_vm1, %v1037_v36  ;;  %v983_v45 = vadd.f32 %v982_v52, %v981_v43 }
 0x22b   :  { %2139 = vset.pattern.permute.xlu0 %v2473_v35  ;;  %2135 = vset.pattern.permute.xlu1 %v2473_v35 }
 0x22c   :  { %1077 = vperm.xlu0 %2139, %v2657_v2   ;;  %1207 = vperm.xlu1 %2135, %v1037_v36   ;;  %v984_v11 = vrot.slane %v983_v45, 1 }
 0x22e   :  { %v985_v14 = vadd.f32 %v984_v11, %v983_v45 }
 0x230   :  { %2302 = vrcp.f32 %v985_v14 }
 0x231   :  { %v3147_v53 = vpop.permute.xlu1 %1232 }
 0x233   :  { %v3176_v33 = vpop.permute.xlu2 %1162 }
 0x234   :  { %1082 = vperm.xlu0 %2139, %v2654_v63   ;;  %2137 = vset.pattern.permute.xlu1 %v2472_v4  ;;  %v1331_v63 = vsel %vm227_vm0, %v1250_v37, 0.0 }
 0x235   :  { %1516 = vperm.xlu1 %2137, %v1037_v36  }
 0x236   :  { %v2303_v60 = vpop.eup %2302 }
 0x237   :  { %v1039_v40 = vmul.f32 %v2303_v60, %v2297_v51  ;;  %v3154_v2 = vmul.f32 %v2303_v60, %v2299_v22 }
 0x239   :  { %v1148_v35 = vpop.permute.xlu1 %1147  ;;  %1217 = vperm.xlu2 %2136, %v1039_v40   ;;  %1071 = vst.msk [vmem:[%s3450_s9 + $0xe0] sm:$0xff] %vm610_vm1, %v1039_v40 }
 0x23a   :  { %v1249_v23 = vmul.f32 %v3156_v58, %v1148_v35  ;;  %1072 = vst.msk [vmem:[%s3450_s9 + $0xe8] sm:$0xff] %vm610_vm1, %v3154_v2 }
 0x23c   :  { %v1330_v6 = vsel %vm227_vm0, %v1249_v23, 0.0  ;;  %1107 = vperm.xlu0 %2139, %v2749_v15   ;;  %v1481_v44 = vpop.permute.xlu2 %1480  ;;  %v3183_v15 = vld [vmem:[#allocation2 + $0x88] sm:$0xff] }
 0x23d   :  { %v3170_v21 = vadd.f32 %v1331_v63, %v1330_v6  ;;  %1464 = vperm.xlu1 %2137, %v2841_v17   ;;  %v1556_v17 = vmul.f32 %v3183_v15, %v1481_v44 }
 0x23f   :  { %v1644_v18 = vsel %vm227_vm0, %v1556_v17, 0.0 }
 0x241   :  { %2138 = vset.pattern.permute.xlu2 %v2472_v4 }
 0x242   :  { %1520 = vperm.xlu2 %2138, %v1038_v29  }
 0x244   :  { %1122 = vperm.xlu0 %2139, %v2786_v61  }
 0x245   :  { %1468 = vperm.xlu1 %2137, %v2882_v57  }
 0x24a   :  { %1524 = vperm.xlu2 %2138, %v1039_v40  }
 0x24c   :  { %v3179_v28 = vpop.permute.xlu1 %1157  ;;  %1167 = vperm.xlu0 %2139, %v2982_v50  }
 0x24d   :  { %1536 = vperm.xlu1 %2137, %v2863_v41  }
 0x252   :  { %1472 = vperm.xlu2 %2138, %v2879_v56  }
 0x254   :  { %1182 = vperm.xlu0 %2139, %v3024_v24   ;;  %v3193_v41 = vpop.permute.xlu2 %1177  ;;  %v3199_v24 = vld [vmem:[#allocation2 + $0x90] sm:$0xff] }
 0x255   :  { %v1477_v61 = vpop.permute.xlu1 %1476 }
 0x256   :  { %v1555_v57 = vmul.f32 %v3188_v54, %v1477_v61 }
 0x258   :  { %v1643_v50 = vsel %vm227_vm0, %v1555_v57, 0.0 }
 0x259   :  { %v1645_v48 = vadd.f32 %v1644_v18, %v1643_v50 }
 0x25b   :  { %v1646_v55 = vrot.slane %v1645_v48, 4  ;;  %v1485_v56 = vpop.permute.xlu0 %1484 }
 0x25c   :  { %1197 = vperm.xlu0 %2139, %v3112_v13   ;;  %v1557_v25 = vmul.f32 %v3199_v24, %v1485_v56 }
 0x25d   :  { %v1497_v22 = vpop.permute.xlu2 %1496  ;;  %v1647_v27 = vadd.f32 %v1646_v55, %v1645_v48  ;;  %v3220_v48 = vld [vmem:[#allocation2 + $0xb0] sm:$0xff] }
 0x25e   :  { %v3196_v51 = vpop.permute.xlu1 %1172  ;;  %v1652_v19 = vsel %vm227_vm0, %v1557_v25, 0.0  ;;  %v3224_v25 = vld [vmem:[#allocation2 + $0xb8] sm:$0xff] }
 0x25f   :  { %v1648_v59 = vrot.slane %v1647_v27, 2 }
 0x261   :  { %v1649_v52 = vadd.f32 %v1648_v59, %v1647_v27 }
 0x263   :  { %v1650_v23 = vrot.slane %v1649_v52, 1 }
 0x264   :  { %1132 = vperm.xlu0 %2139, %v2811_v46   ;;  %v3208_v46 = vld [vmem:[#allocation2 + $0xa8] sm:$0xff] }
 0x265   :  { %v1560_v36 = vmul.f32 %v3208_v46, %v1497_v22  ;;  %v1651_v17 = vadd.f32 %v1650_v23, %v1649_v52 }
 0x266   :  { %v3211_v45 = vpop.permute.xlu2 %1192 }
 0x267   :  { %v1489_v12 = vpop.permute.xlu1 %1488  ;;  %v1662_v35 = vsel %vm227_vm0, %v1560_v36, 0.0 }
 0x268   :  { %v1558_v32 = vmul.f32 %v3202_v49, %v1489_v12 }
 0x26a   :  { %v1653_v13 = vsel %vm227_vm0, %v1558_v32, 0.0 }
 0x26b   :  { %v1654_v43 = vadd.f32 %v1653_v13, %v1652_v19 }
 0x26c   :  { %1137 = vperm.xlu0 %2139, %v2844_v20  }
 0x26d   :  { %v1655_v29 = vrot.slane %v1654_v43, 4 }
 0x26f   :  { %v1656_v11 = vadd.f32 %v1655_v29, %v1654_v43  ;;  %v1493_v14 = vpop.permute.xlu1 %1492  ;;  %v1501_v18 = vpop.permute.xlu2 %1500 }
 0x270   :  { %v1559_v60 = vmul.f32 %v3213_v5, %v1493_v14  ;;  %v1561_v55 = vmul.f32 %v3220_v48, %v1501_v18 }
 0x271   :  { %v1657_v37 = vrot.slane %v1656_v11, 2 }
 0x272   :  { %v1661_v40 = vsel %vm227_vm0, %v1559_v60, 0.0  ;;  %v1670_v12 = vsel %vm227_vm0, %v1561_v55, 0.0 }
 0x273   :  { %v1658_v20 = vadd.f32 %v1657_v37, %v1656_v11  ;;  %v1663_v63 = vadd.f32 %v1662_v35, %v1661_v40  ;;  %v2089_v11 = vld [vmem:[#allocation5 + $0x8] sm:$0xff] }
 0x274   :  { %1227 = vperm.xlu0 %2139, %v2913_v26   ;;  %1820 = vmatpush.bf16.msrb.mxu2 %v2089_v11 }
 0x275   :  { %v1659_v6 = vrot.slane %v1658_v20, 1  ;;  %v1664_v44 = vrot.slane %v1663_v63, 4 }
 0x277   :  { %v1660_v61 = vadd.f32 %v1659_v6, %v1658_v20  ;;  %v1665_v50 = vadd.f32 %v1664_v44, %v1663_v63  ;;  %v3238_v63 = vld [vmem:[#allocation2 + $0xc0] sm:$0xff] }
 0x279   :  { %v1777_v57 = vsel %vm1731_vm2, %v1660_v61, %v1651_v17  ;;  %v1666_v22 = vrot.slane %v1665_v50, 2  ;;  %v3241_v17 = vld [vmem:[#allocation2 + $0xc8] sm:$0xff] }
 0x27b   :  { %v1667_v13 = vadd.f32 %v1666_v22, %v1665_v50 }
 0x27c   :  { %1222 = vperm.xlu0 %2139, %v3154_v2   ;;  %v1505_v56 = vpop.permute.xlu0 %1504  ;;  %v3230_v36 = vpop.permute.xlu1 %1187 }
 0x27d   :  { %v1562_v27 = vmul.f32 %v3224_v25, %v1505_v56  ;;  %v1668_v29 = vrot.slane %v1667_v13, 1 }
 0x27f   :  { %v1671_v32 = vsel %vm227_vm0, %v1562_v27, 0.0  ;;  %v1669_v60 = vadd.f32 %v1668_v29, %v1667_v13 }
 0x280   :  { %v1672_v19 = vadd.f32 %v1671_v32, %v1670_v12  ;;  %v1279_v12 = vrot.slane %v2965_v42, 4 }
 0x281   :  { %v1778_v40 = vsel %vm1733_vm3, %v1669_v60, %v1777_v57 }
 0x282   :  { %v1673_v59 = vrot.slane %v1672_v19, 4 }
 0x284   :  { %v1674_v43 = vadd.f32 %v1673_v59, %v1672_v19  ;;  %2140 = vset.pattern.permute.xlu0 %v2472_v4  ;;  %v1288_v19 = vrot.slane %v2941_v10, 4 }
 0x285   :  { %1528 = vperm.xlu0 %2140, %v3154_v2  }
 0x286   :  { %v1675_v52 = vrot.slane %v1674_v43, 2  ;;  %v1289_v11 = vadd.f32 %v1288_v19, %v2941_v10 }
 0x288   :  { %v1676_v14 = vadd.f32 %v1675_v52, %v1674_v43  ;;  %v1280_v43 = vadd.f32 %v1279_v12, %v2965_v42  ;;  %v1242_v42 = vmul.f32 %v3043_v47, %v3011_v9  ;;  %v3269_v12 = vld [vmem:[#allocation2 + $0x68] sm:$0xff] }
 0x28a   :  { %v1677_v37 = vrot.slane %v1676_v14, 1 }
 0x28c   :  { %v1678_v35 = vadd.f32 %v1677_v37, %v1676_v14  ;;  %v3234_v23 = vpop.permute.xlu1 %1202 }
 0x28d   :  { %v1509_v20 = vpop.permute.xlu0 %1508  ;;  %1532 = vperm.xlu0 %2140, %v2913_v26  }
 0x28e   :  { %v1779_v4 = vsel %vm1735_vm4, %v1678_v35, %v1778_v40  ;;  %v1563_v2 = vmul.f32 %v3238_v63, %v1509_v20  ;;  %v1281_v20 = vrot.slane %v1280_v43, 2 }
 0x290   :  { %v1679_v18 = vsel %vm227_vm0, %v1563_v2, 0.0 }
 0x295   :  { %v1461_v6 = vpop.permute.xlu0 %1460  ;;  %v1513_v44 = vpop.permute.xlu1 %1512 }
 0x296   :  { %v1564_v61 = vmul.f32 %v3241_v17, %v1513_v44 }
 0x298   :  { %v1680_v57 = vsel %vm227_vm0, %v1564_v61, 0.0  ;;  %v1282_v61 = vadd.f32 %v1281_v20, %v1280_v43 }
 0x299   :  { %v1681_v50 = vadd.f32 %v1680_v57, %v1679_v18  ;;  %v3263_v57 = vld [vmem:[#allocation2 + $0x60] sm:$0xff] }
 0x29a   :  { %v1283_v47 = vrot.slane %v1282_v61, 1 }
 0x29b   :  { %v1682_v55 = vrot.slane %v1681_v50, 4 }
 0x29d   :  { %v1683_v56 = vadd.f32 %v1682_v55, %v1681_v50 }
 0x29e   :  { %v1078_v26 = vpop.permute.xlu0 %1077  ;;  %v3246_v22 = vpop.permute.xlu1 %1207 }
 0x29f   :  { %v1684_v27 = vrot.slane %v1683_v56, 2  ;;  %v1235_v59 = vmul.f32 %v2884_v62, %v1078_v26  ;;  %v1290_v62 = vrot.slane %v1289_v11, 2  ;;  %v1295_v26 = vsel %vm227_vm0, %v1242_v42, 0.0 }
 0x2a1   :  { %v1685_v32 = vadd.f32 %v1684_v27, %v1683_v56  ;;  %v1267_v35 = vsel %vm227_vm0, %v1235_v59, 0.0 }
 0x2a3   :  { %v1686_v13 = vrot.slane %v1685_v32, 1 }
 0x2a5   :  { %v1687_v29 = vadd.f32 %v1686_v13, %v1685_v32 }
 0x2a6   :  { %v1083_v52 = vpop.permute.xlu0 %1082 }
 0x2a7   :  { %v1236_v14 = vmul.f32 %v2903_v8, %v1083_v52  ;;  %v3254_v60 = vpop.permute.xlu1 %1516  ;;  %v3257_v37 = vsel %vm1737_vm5, %v1687_v29, %v1779_v4  ;;  %v1291_v8 = vadd.f32 %v1290_v62, %v1289_v11  ;;  %v1551_v4 = vmul.f32 %v3263_v57, %v1461_v6 }
 0x2a8   :  { %v1243_v52 = vmul.f32 %v3071_v30, %v3008_v1  ;;  %v1284_v11 = vadd.f32 %v1283_v47, %v1282_v61 }
 0x2a9   :  { %v1268_v40 = vsel %vm227_vm0, %v1236_v14, 0.0  ;;  %v1292_v13 = vrot.slane %v1291_v8, 1  ;;  %v1625_v59 = vsel %vm227_vm0, %v1551_v4, 0.0 }
 0x2aa   :  { %v1269_v2 = vadd.f32 %v1268_v40, %v1267_v35 }
 0x2ac   :  { %v1270_v44 = vrot.slane %v1269_v2, 4 }
 0x2ae   :  { %v1271_v10 = vadd.f32 %v1270_v44, %v1269_v2  ;;  %v1108_v18 = vpop.permute.xlu0 %1107  ;;  %v1293_v2 = vadd.f32 %v1292_v13, %v1291_v8  ;;  %v2088_v13 = vld [vmem:[#allocation5] sm:$0xff] }
 0x2af   :  { %v1241_v50 = vmul.f32 %v3033_v34, %v1108_v18  ;;  %v1465_v56 = vpop.permute.xlu1 %1464  ;;  %v1303_v18 = vsel %vm227_vm0, %v1243_v52, 0.0  ;;  %1821 = vmatpush.bf16.msrb.mxu2 %v2088_v13  ;;  %v1213_v52 = vpop.permute.xlu2 %1212 }
 0x2b0   :  { %v1272_v55 = vrot.slane %v1271_v10, 2  ;;  %v1552_v9 = vmul.f32 %v3269_v12, %v1465_v56 }
 0x2b1   :  { %v1294_v27 = vsel %vm227_vm0, %v1241_v50, 0.0 }
 0x2b2   :  { %v1273_v32 = vadd.f32 %v1272_v55, %v1271_v10  ;;  %v1296_v19 = vadd.f32 %v1295_v26, %v1294_v27  ;;  %v1626_v6 = vsel %vm227_vm0, %v1552_v9, 0.0 }
 0x2b3   :  { %v1627_v29 = vadd.f32 %v1626_v6, %v1625_v59 }
 0x2b4   :  { %v1274_v43 = vrot.slane %v1273_v32, 1  ;;  %v1297_v34 = vrot.slane %v1296_v19, 4 }
 0x2b5   :  { %v1628_v40 = vrot.slane %v1627_v29, 4 }
 0x2b6   :  { %v1275_v14 = vadd.f32 %v1274_v43, %v1273_v32  ;;  %v1298_v35 = vadd.f32 %v1297_v34, %v1296_v19  ;;  %v1123_v20 = vpop.permute.xlu0 %1122 }
 0x2b7   :  { %v1244_v62 = vmul.f32 %v3056_v7, %v1123_v20  ;;  %v1629_v10 = vadd.f32 %v1628_v40, %v1627_v29  ;;  %v1251_v40 = vmul.f32 %v3188_v54, %v3179_v28  ;;  %v1245_v20 = vmul.f32 %v3098_v31, %v3069_v16 }
 0x2b8   :  { %v1732_v44 = vsel %vm1731_vm2, %v1284_v11, %v1275_v14  ;;  %v1299_v42 = vrot.slane %v1298_v35, 2  ;;  %v1257_v28 = vmul.f32 %v3220_v48, %v3230_v36  ;;  %v1255_v16 = vmul.f32 %v3213_v5, %v3193_v41 }
 0x2b9   :  { %v1734_v4 = vsel %vm1733_vm3, %v1293_v2, %v1732_v44  ;;  %v1304_v50 = vsel %vm227_vm0, %v1244_v62, 0.0  ;;  %v1630_v1 = vrot.slane %v1629_v10, 2  ;;  %v1333_v44 = vrot.slane %v3170_v21, 4 }
 0x2ba   :  { %v1300_v55 = vadd.f32 %v1299_v42, %v1298_v35  ;;  %v1305_v30 = vadd.f32 %v1304_v50, %v1303_v18  ;;  %v3289_v35 = vpop.permute.xlu2 %1217  ;;  %v1339_v42 = vsel %vm227_vm0, %v1251_v40, 0.0  ;;  %v1366_v36 = vsel %vm227_vm0, %v1257_v28, 0.0 }
 0x2bb   :  { %v1631_v56 = vadd.f32 %v1630_v1, %v1629_v10  ;;  %v1254_v10 = vmul.f32 %v3202_v49, %v3196_v51 }
 0x2bc   :  { %v1301_v61 = vrot.slane %v1300_v55, 1  ;;  %v1306_v26 = vrot.slane %v1305_v30, 4 }
 0x2bd   :  { %v1632_v8 = vrot.slane %v1631_v56, 1  ;;  %v1349_v5 = vsel %vm227_vm0, %v1254_v10, 0.0 }
 0x2be   :  { %v1302_v27 = vadd.f32 %v1301_v61, %v1300_v55  ;;  %v1307_v9 = vadd.f32 %v1306_v26, %v1305_v30  ;;  %v1168_v7 = vpop.permute.xlu0 %1167 }
 0x2bf   :  { %v1633_v32 = vadd.f32 %v1632_v8, %v1631_v56  ;;  %v1253_v2 = vmul.f32 %v3199_v24, %v1168_v7  ;;  %v1258_v24 = vmul.f32 %v3224_v25, %v3211_v45  ;;  %v1357_v45 = vsel %vm227_vm0, %v1255_v16, 0.0 }
 0x2c0   :  { %v1736_v47 = vsel %vm1735_vm4, %v1302_v27, %v1734_v4  ;;  %v1308_v19 = vrot.slane %v1307_v9, 2  ;;  %v1260_v25 = vmul.f32 %v3241_v17, %v3234_v23  ;;  %v2356_v27 = vld [vmem:[#allocation2 + $0xd0] sm:$0xff] }
 0x2c1   :  { %v3284_v6 = vsel %vm1741_vm7, %v1633_v32, %v3130_v0  ;;  %v1252_v0 = vmul.f32 %v3183_v15, %v3176_v33  ;;  %v1312_v33 = vsel %vm227_vm0, %v1245_v20, 0.0  ;;  %v1367_v55 = vsel %vm227_vm0, %v1258_v24, 0.0  ;;  %v3334_v20 = vld [vmem:[#allocation2 + $0xf8] sm:$0xff] }
 0x2c2   :  { %v1309_v59 = vadd.f32 %v1308_v19, %v1307_v9  ;;  %v3313_v51 = vpop.permute.xlu2 %1520  ;;  %v1261_v8 = vmul.f32 %v2356_v27, %v3246_v22  ;;  %v1376_v17 = vsel %vm227_vm0, %v1260_v25, 0.0 }
 0x2c3   :  { %v1340_v15 = vsel %vm227_vm0, %v1252_v0, 0.0 }
 0x2c4   :  { %v1310_v43 = vrot.slane %v1309_v59, 1  ;;  %v1341_v18 = vadd.f32 %v1340_v15, %v1339_v42  ;;  %v1384_v22 = vsel %vm227_vm0, %v1261_v8, 0.0 }
 0x2c6   :  { %v1311_v34 = vadd.f32 %v1310_v43, %v1309_v59  ;;  %v1183_v29 = vpop.permute.xlu0 %1182  ;;  %v1342_v61 = vrot.slane %v1341_v18, 4 }
 0x2c7   :  { %v1256_v62 = vmul.f32 %v3208_v46, %v1183_v29  ;;  %v1348_v46 = vsel %vm227_vm0, %v1253_v2, 0.0 }
 0x2c8   :  { %v3287_v11 = vsel %vm1737_vm5, %v1311_v34, %v1736_v47  ;;  %v1350_v50 = vadd.f32 %v1349_v5, %v1348_v46  ;;  %v2357_v47 = vld [vmem:[#allocation2 + $0xd8] sm:$0xff]  ;;  %v1343_v43 = vadd.f32 %v1342_v61, %v1341_v18  ;;  %v1469_v61 = vpop.permute.xlu1 %1468 }
 0x2c9   :  { %v1358_v49 = vsel %vm227_vm0, %v1256_v62, 0.0  ;;  %v1262_v23 = vmul.f32 %v2357_v47, %v1213_v52  ;;  %v1266_v52 = vmul.f32 %v3334_v20, %v3147_v53 }
 0x2ca   :  { %v1359_v1 = vadd.f32 %v1358_v49, %v1357_v45  ;;  %v1351_v32 = vrot.slane %v1350_v50, 4  ;;  %v3339_v2 = vpop.permute.xlu2 %1524  ;;  %v3342_v49 = vld [vmem:[#allocation2 + $0xf0] sm:$0xff] }
 0x2cb   :  { %v1403_v46 = vsel %vm227_vm0, %v1266_v52, 0.0 }
 0x2cc   :  { %v1360_v13 = vrot.slane %v1359_v1, 4  ;;  %v1352_v62 = vadd.f32 %v1351_v32, %v1350_v50 }
 0x2ce   :  { %v1198_v14 = vpop.permute.xlu0 %1197  ;;  %v1353_v53 = vrot.slane %v1352_v62, 2 }
 0x2cf   :  { %v1259_v48 = vmul.f32 %v3238_v63, %v1198_v14  ;;  %v1248_v63 = vmul.f32 %v3269_v12, %v3134_v39 }
 0x2d1   :  { %v1375_v56 = vsel %vm227_vm0, %v1259_v48, 0.0  ;;  %v1322_v12 = vsel %vm227_vm0, %v1248_v63, 0.0  ;;  %v1565_v63 = vmul.f32 %v2356_v27, %v3254_v60 }
 0x2d2   :  { %v1377_v59 = vadd.f32 %v1376_v17, %v1375_v56  ;;  %v2360_v17 = vld [vmem:[#allocation2 + $0xe0] sm:$0xff] }
 0x2d3   :  { %v1688_v60 = vsel %vm227_vm0, %v1565_v63, 0.0 }
 0x2d4   :  { %v1378_v42 = vrot.slane %v1377_v59, 4 }
 0x2d6   :  { %v1133_v54 = vpop.permute.xlu0 %1132 }
 0x2d7   :  { %v1246_v31 = vmul.f32 %v3102_v38, %v1133_v54  ;;  %v1334_v38 = vadd.f32 %v1333_v44, %v3170_v21  ;;  %v1368_v21 = vadd.f32 %v1367_v55, %v1366_v36  ;;  %v1361_v44 = vadd.f32 %v1360_v13, %v1359_v1 }
 0x2d8   :  { %v1344_v54 = vrot.slane %v1343_v43, 2  ;;  %v1566_v13 = vmul.f32 %v2357_v47, %v3313_v51 }
 0x2d9   :  { %v1313_v41 = vsel %vm227_vm0, %v1246_v31, 0.0  ;;  %v1335_v26 = vrot.slane %v1334_v38, 2  ;;  %v1369_v34 = vrot.slane %v1368_v21, 4 }
 0x2da   :  { %v1314_v4 = vadd.f32 %v1313_v41, %v1312_v33  ;;  %v1362_v41 = vrot.slane %v1361_v44, 2 }
 0x2db   :  { %v1336_v0 = vadd.f32 %v1335_v26, %v1334_v38  ;;  %v1370_v16 = vadd.f32 %v1369_v34, %v1368_v21  ;;  %v1379_v38 = vadd.f32 %v1378_v42, %v1377_v59  ;;  %v1354_v21 = vadd.f32 %v1353_v53, %v1352_v62  ;;  %v2361_v34 = vld [vmem:[#allocation2 + $0xe8] sm:$0xff] }
 0x2dc   :  { %v1315_v30 = vrot.slane %v1314_v4, 4  ;;  %v1363_v56 = vadd.f32 %v1362_v41, %v1361_v44  ;;  %v1553_v59 = vmul.f32 %v3156_v58, %v1469_v61  ;;  %v1537_v61 = vpop.permute.xlu1 %1536 }
 0x2dd   :  { %v1337_v18 = vrot.slane %v1336_v0, 1  ;;  %v1371_v45 = vrot.slane %v1370_v16, 2  ;;  %v1380_v26 = vrot.slane %v1379_v38, 2  ;;  %v1355_v27 = vrot.slane %v1354_v21, 1 }
 0x2de   :  { %v1316_v9 = vadd.f32 %v1315_v30, %v1314_v4  ;;  %v1138_v7 = vpop.permute.xlu0 %1137  ;;  %v1345_v4 = vadd.f32 %v1344_v54, %v1343_v43 }
 0x2df   :  { %v1247_v19 = vmul.f32 %v3263_v57, %v1138_v7  ;;  %v1385_v57 = vsel %vm227_vm0, %v1262_v23, 0.0  ;;  %v1338_v30 = vadd.f32 %v1337_v18, %v1336_v0  ;;  %v1372_v23 = vadd.f32 %v1371_v45, %v1370_v16 }
 0x2e0   :  { %v1317_v39 = vrot.slane %v1316_v9, 2  ;;  %v1386_v31 = vadd.f32 %v1385_v57, %v1384_v22  ;;  %v1346_v7 = vrot.slane %v1345_v4, 1  ;;  %v1689_v0 = vsel %vm227_vm0, %v1566_v13, 0.0 }
 0x2e1   :  { %v1321_v29 = vsel %vm227_vm0, %v1247_v19, 0.0  ;;  %v1473_v19 = vpop.permute.xlu2 %1472  ;;  %v1634_v57 = vsel %vm227_vm0, %v1553_v59, 0.0  ;;  %v1690_v44 = vadd.f32 %v1689_v0, %v1688_v60  ;;  %v1356_v42 = vadd.f32 %v1355_v27, %v1354_v21 }
 0x2e2   :  { %v1318_v14 = vadd.f32 %v1317_v39, %v1316_v9  ;;  %v1323_v40 = vadd.f32 %v1322_v12, %v1321_v29  ;;  %v1387_v25 = vrot.slane %v1386_v31, 4  ;;  %v1554_v22 = vmul.f32 %v3151_v3, %v1473_v19 }
 0x2e3   :  { %v1691_v53 = vrot.slane %v1690_v44, 4 }
 0x2e4   :  { %v1319_v10 = vrot.slane %v1318_v14, 1  ;;  %v1324_v28 = vrot.slane %v1323_v40, 4  ;;  %v1388_v32 = vadd.f32 %v1387_v25, %v1386_v31  ;;  %v1635_v3 = vsel %vm227_vm0, %v1554_v22, 0.0 }
 0x2e5   :  { %v1347_v31 = vadd.f32 %v1346_v7, %v1345_v4 }
 0x2e6   :  { %v1320_v33 = vadd.f32 %v1319_v10, %v1318_v14  ;;  %v1325_v15 = vadd.f32 %v1324_v28, %v1323_v40  ;;  %v1228_v24 = vpop.permute.xlu0 %1227  ;;  %v1364_v14 = vrot.slane %v1363_v56, 1  ;;  %v1381_v40 = vadd.f32 %v1380_v26, %v1379_v38 }
 0x2e7   :  { %v1265_v48 = vmul.f32 %v3342_v49, %v1228_v24  ;;  %v1389_v51 = vrot.slane %v1388_v32, 2  ;;  %v1636_v24 = vadd.f32 %v1635_v3, %v1634_v57 }
 0x2e8   :  { %v1326_v5 = vrot.slane %v1325_v15, 2  ;;  %v1740_v36 = vsel %vm1739_vm6, %v1320_v33, %v3287_v11  ;;  %v1263_v11 = vmul.f32 %v2360_v17, %v3289_v35  ;;  %v1365_v28 = vadd.f32 %v1364_v14, %v1363_v56 }
 0x2e9   :  { %v1402_v50 = vsel %vm227_vm0, %v1265_v48, 0.0  ;;  %v1382_v54 = vrot.slane %v1381_v40, 1  ;;  %v1373_v33 = vrot.slane %v1372_v23, 1  ;;  %v1745_v48 = vsel %vm1731_vm2, %v1356_v42, %v1347_v31 }
 0x2ea   :  { %v1327_v55 = vadd.f32 %v1326_v5, %v1325_v15  ;;  %v1404_v1 = vadd.f32 %v1403_v46, %v1402_v50  ;;  %v1393_v52 = vsel %vm227_vm0, %v1263_v11, 0.0  ;;  %v1390_v15 = vadd.f32 %v1389_v51, %v1388_v32 }
 0x2eb   :  { %v1567_v46 = vmul.f32 %v2360_v17, %v3339_v2  ;;  %v1746_v5 = vsel %vm1733_vm3, %v1365_v28, %v1745_v48  ;;  %v1374_v50 = vadd.f32 %v1373_v33, %v1372_v23  ;;  %v1692_v2 = vadd.f32 %v1691_v53, %v1690_v44 }
 0x2ec   :  { %v1328_v8 = vrot.slane %v1327_v55, 1  ;;  %v1405_v9 = vrot.slane %v1404_v1, 4  ;;  %v1570_v23 = vmul.f32 %v3334_v20, %v1537_v61 }
 0x2ed   :  { %v1697_v4 = vsel %vm227_vm0, %v1567_v46, 0.0  ;;  %v1747_v21 = vsel %vm1735_vm4, %v1374_v50, %v1746_v5  ;;  %v1693_v19 = vrot.slane %v1692_v2, 2  ;;  %v2141_v46 = vld [vmem:[%s3446_s5] ss:$0 sm:$0xff] }
 0x2ee   :  { %v1329_v39 = vadd.f32 %v1328_v8, %v1327_v55  ;;  %v1223_v12 = vpop.permute.xlu0 %1222  ;;  %v1406_v43 = vadd.f32 %v1405_v9, %v1404_v1  ;;  %v1391_v55 = vrot.slane %v1390_v15, 1  ;;  %v1637_v1 = vrot.slane %v1636_v24, 4 }
 0x2ef   :  { %v1264_v29 = vmul.f32 %v2361_v34, %v1223_v12  ;;  %v1707_v22 = vsel %vm227_vm0, %v1570_v23, 0.0 }
 0x2f0   :  { %v1742_v35 = vsel %vm1741_vm7, %v1329_v39, %v1740_v36  ;;  %v1407_v10 = vrot.slane %v1406_v43, 2  ;;  %v1383_v36 = vadd.f32 %v1382_v54, %v1381_v40  ;;  %v1392_v7 = vadd.f32 %v1391_v55, %v1390_v15 }
 0x2f1   :  { %v1394_v58 = vsel %vm227_vm0, %v1264_v29, 0.0  ;;  %v1744_v47 = vsel %vm1743_vm8, %v1338_v30, %v1742_v35  ;;  %v1638_v17 = vadd.f32 %v1637_v1, %v1636_v24  ;;  %v1694_v40 = vadd.f32 %v1693_v19, %v1692_v2  ;;  %v1853_v1 = vld [vmem:[%s3442_s1] sm:$0xff] }
 0x2f2   :  { %v1395_v62 = vadd.f32 %v1394_v58, %v1393_v52  ;;  %v1408_v41 = vadd.f32 %v1407_v10, %v1406_v43  ;;  %v1748_v8 = vsel %vm1737_vm5, %v1383_v36, %v1747_v21 }
 0x2f3   :  { %v1749_v12 = vsel %vm1739_vm6, %v1392_v7, %v1748_v8  ;;  %v1639_v43 = vrot.slane %v1638_v17, 2  ;;  %v1695_v0 = vrot.slane %v1694_v40, 1 }
 0x2f4   :  { %v1396_v16 = vrot.slane %v1395_v62, 4  ;;  %v1409_v56 = vrot.slane %v1408_v41, 1 }
 0x2f5   :  { %v1640_v51 = vadd.f32 %v1639_v43, %v1638_v17  ;;  %v1696_v42 = vadd.f32 %v1695_v0, %v1694_v40 }
 0x2f6   :  { %v1397_v18 = vadd.f32 %v1396_v16, %v1395_v62  ;;  %v1410_v13 = vadd.f32 %v1409_v56, %v1408_v41 }
 0x2f7   :  { %v1529_v38 = vpop.permute.xlu0 %1528  ;;  %v1641_v62 = vrot.slane %v1640_v51, 1 }
 0x2f8   :  { %v1398_v45 = vrot.slane %v1397_v18, 2  ;;  %v1568_v25 = vmul.f32 %v2361_v34, %v1529_v38 }
 0x2f9   :  { %v1642_v54 = vadd.f32 %v1641_v62, %v1640_v51 }
 0x2fa   :  { %v1399_v30 = vadd.f32 %v1398_v45, %v1397_v18  ;;  %v1698_v63 = vsel %vm227_vm0, %v1568_v25, 0.0 }
 0x2fb   :  { %v1699_v26 = vadd.f32 %v1698_v63, %v1697_v4  ;;  %v1776_v33 = vsel %vm1743_vm8, %v1642_v54, %v3284_v6 }
 0x2fc   :  { %v1400_v9 = vrot.slane %v1399_v30, 1 }
 0x2fd   :  { %v1700_v11 = vrot.slane %v1699_v26, 4 }
 0x2fe   :  { %v1401_v32 = vadd.f32 %v1400_v9, %v1399_v30  ;;  %v1854_v9 = vld [vmem:[%s3442_s1 + $0x8] sm:$0xff]  ;;  %s2475_s1 = smov [#allocation8]  }
 0x2ff   :  { %v1701_v59 = vadd.f32 %v1700_v11, %v1699_v26  ;;  %v1533_v39 = vpop.permute.xlu0 %1532  ;;  %s1997_s17 = sshll.u32 %s2475_s1, 4  ;;  %s1998_s17 = int_to_ptr.vmem [resolvable:$true] %s1997_s17 }
 0x300   :  { %v1569_v60 = vmul.f32 %v3342_v49, %v1533_v39  ;;  %v1750_v27 = vsel %vm1741_vm7, %v1401_v32, %v1749_v12 }
 0x301   :  { %v1702_v34 = vrot.slane %v1701_v59, 2  ;;  %v1751_v29 = vsel %vm1743_vm8, %v1410_v13, %v1750_v27 }
 0x302   :  { %v1706_v14 = vsel %vm227_vm0, %v1569_v60, 0.0  ;;  %v1786_v20 = vpack.c.bf16 %v1751_v29, %v1744_v47  ;;  %v1781_v47 = vsel %vm1739_vm6, %v1696_v42, %v3257_v37  ;;  %v2474_v29 = vmov 32.0  }
 0x303   :  { %v1708_v35 = vadd.f32 %v1707_v22, %v1706_v14  ;;  %v1703_v52 = vadd.f32 %v1702_v34, %v1701_v59 }
 0x304   :  { %2084 = vmatmul.msk.bf16.vlgmr.msrb.gmra.mxu2 %vm227_vm0, %v1786_v20 }
 0x305   :  { %v1709_v58 = vrot.slane %v1708_v35, 4  ;;  %v1704_v57 = vrot.slane %v1703_v52, 1 }
 0x307   :  { %v1710_v49 = vadd.f32 %v1709_v58, %v1708_v35  ;;  %v1705_v3 = vadd.f32 %v1704_v57, %v1703_v52 }
 0x309   :  { %v1711_v44 = vrot.slane %v1710_v49, 2  ;;  %v1782_v31 = vsel %vm1741_vm7, %v1705_v3, %v1781_v47 }
 0x30b   :  { %v1712_v10 = vadd.f32 %v1711_v44, %v1710_v49 }
 0x30d   :  { %v1713_v28 = vrot.slane %v1712_v10, 1 }
 0x30f   :  { %v1714_v16 = vadd.f32 %v1713_v28, %v1712_v10 }
 0x311   :  { %v1783_v15 = vsel %vm1743_vm8, %v1714_v16, %v1782_v31 }
 0x312   :  { %v1787_v24 = vpack.c.bf16 %v1783_v15, %v1776_v33 }
 0x314   :  { %2085 = vmatmul.msk.bf16.gmra.mxu2 %vm227_vm0, %v1787_v24 }
 0x387   :  { %v1823_v18 = vpop.f32.mrf.mxu2 }
 0x388   :  { %v1824_v53 = vadd.f32 %v2141_v46, %v1823_v18 }
 0x38a   :  { %v1833_v48 = vsub.f32 0.0, %v1824_v53 }
 0x38c   :  { %v1837_v41 = vmul.f32 1.442695, %v1833_v48 }
 0x38e   :  { %2304 = vpow2.f32 %v1837_v41 }
 0x38f   :  { %v1825_v37 = vpop.f32.mrf.mxu2 }
 0x390   :  { %v1826_v38 = vadd.f32 %v2141_v46, %v1825_v37 }
 0x392   :  { %v1834_v5 = vsub.f32 0.0, %v1826_v38 }
 0x394   :  { %v2305_v36 = vpop.eup %2304  ;;  %v1839_v45 = vmul.f32 1.442695, %v1834_v5 }
 0x395   :  { %v1845_v6 = vadd.f32 1.0, %v2305_v36 }
 0x396   :  { %2306 = vpow2.f32 %v1839_v45 }
 0x397   :  { %2308 = vrcp.f32 %v1845_v6  ;;  %v1828_v25 = vpop.f32.mrf.mxu2 }
 0x398   :  { %v1829_v50 = vadd.f32 %v2141_v46, %v1828_v25 }
 0x39a   :  { %v1835_v55 = vsub.f32 0.0, %v1829_v50 }
 0x39c   :  { %v2307_v4 = vpop.eup %2306  ;;  %v1841_v30 = vmul.f32 1.442695, %v1835_v55 }
 0x39d   :  { %v2309_v63 = vpop.eup %2308  ;;  %v1846_v2 = vadd.f32 1.0, %v2307_v4 }
 0x39e   :  { %1970 = vst.msk [vmem:[#allocation8] sm:$0xff] %vm227_vm0, %v2309_v63  ;;  %2310 = vpow2.f32 %v1841_v30  ;;  %v1855_v61 = vadd.f32 %v2309_v63, %v1853_v1 }
 0x39f   :  { %2312 = vrcp.f32 %v1846_v2  ;;  %v1830_v21 = vpop.f32.mrf.mxu2 }
 0x3a0   :  { %v1831_v56 = vadd.f32 %v2141_v46, %v1830_v21  ;;  %v1859_v26 = vsel %vm227_vm0, %v1855_v61, 0.0 }
 0x3a1   :  { %1860 = vadd.xlane.f32.xlu2 %v1859_v26  ;;  %v2143_v26 = vld [vmem:[%s3448_s7] ss:$0 sm:$0xff] }
 0x3a2   :  { %v1836_v8 = vsub.f32 0.0, %v1831_v56 }
 0x3a4   :  { %v2311_v7 = vpop.eup %2310  ;;  %v1843_v17 = vmul.f32 1.442695, %v1836_v8 }
 0x3a5   :  { %v2313_v11 = vpop.eup %2312  ;;  %v1847_v23 = vadd.f32 1.0, %v2311_v7 }
 0x3a6   :  { %1971 = vst.msk [vmem:[#allocation8 + $0x8] sm:$0xff] %vm227_vm0, %v2313_v11  ;;  %2314 = vpow2.f32 %v1843_v17  ;;  %v1856_v32 = vadd.f32 %v2313_v11, %v1854_v9 }
 0x3a7   :  { %2316 = vrcp.f32 %v1847_v23 }
 0x3a8   :  { %v1862_v19 = vsel %vm227_vm0, %v1856_v32, 0.0 }
 0x3a9   :  { %1863 = vadd.xlane.f32.xlu0 %v1862_v19 }
 0x3ac   :  { %v2315_v13 = vpop.eup %2314 }
 0x3ad   :  { %v2317_v59 = vpop.eup %2316  ;;  %v1848_v39 = vadd.f32 1.0, %v2315_v13 }
 0x3ae   :  { %1972 = vst.msk [vmem:[#allocation8 + $0x10] sm:$0xff] %vm227_vm0, %v2317_v59  ;;  %v1857_v12 = vadd.f32 %v2317_v59, %v1853_v1 }
 0x3af   :  { %2318 = vrcp.f32 %v1848_v39 }
 0x3b0   :  { %v1865_v60 = vsel %vm227_vm0, %v1857_v12, 0.0  ;;  %2320 = vrcp.f32 %v2474_v29 }
 0x3b1   :  { %1866 = vadd.xlane.f32.xlu1 %v1865_v60 }
 0x3b5   :  { %v2319_v27 = vpop.eup %2318 }
 0x3b6   :  { %1973 = vst.msk [vmem:[#allocation8 + $0x18] sm:$0xff] %vm227_vm0, %v2319_v27  ;;  %v1858_v43 = vadd.f32 %v2319_v27, %v1854_v9  ;;  %v2321_v22 = vpop.eup %2320 }
 0x3b7   :  { %v1872_v14 = vmul.f32 32.0, %v2321_v22  ;;  %vm1876_vm9 = vweird.f32 %v2321_v22  ;;  %2005 = dma.vmem_to_hbm [thread:$0]  %s1998_s17, 512, %s2000_s20, [#allocation9], %s2467_s21, %s2467_s21, %s2468_s22  }
 0x3b8   :  { %v1868_v34 = vsel %vm227_vm0, %v1858_v43, 0.0 }
 0x3b9   :  { %1869 = vadd.xlane.f32.xlu2 %v1868_v34  ;;  %v1873_v20 = vsub.f32 1.0, %v1872_v14 }
 0x3bb   :  { %v1874_v40 = vmul.f32 %v2321_v22, %v1873_v20 }
 0x3bd   :  { %v1875_v35 = vadd.f32 %v2321_v22, %v1874_v40 }
 0x3bf   :  { %v1877_v52 = vsel %vm1876_vm9, %v2321_v22, %v1875_v35 }
 0x414   :  { %v1861_v51 = vpop.xlane.xlu2 %1860 }
 0x415   :  { %v1878_v58 = vmul.f32 %v1877_v52, %v1861_v51 }
 0x417   :  { %v1882_v0 = vsub.f32 %v1855_v61, %v1878_v58  ;;  %v2142_v61 = vld [vmem:[%s3447_s6] ss:$0 sm:$0xff]  ;;  %s2476_s6 = smov [#allocation7]  }
 0x418   :  { %s1982_s7 = sshll.u32 %s2476_s6, 4  ;;  %s1983_s7 = int_to_ptr.vmem [resolvable:$true] %s1982_s7 }
 0x419   :  { %v1886_v49 = vmul.f32 %v1882_v0, %v1882_v0 }
 0x41b   :  { %v1890_v57 = vsel %vm227_vm0, %v1886_v49, 0.0 }
 0x41c   :  { %v1864_v62 = vpop.xlane.xlu0 %1863  ;;  %1891 = vadd.xlane.f32.xlu2 %v1890_v57 }
 0x41d   :  { %v1879_v44 = vmul.f32 %v1877_v52, %v1864_v62 }
 0x41f   :  { %v3401_v42 = vsub.f32 %v1856_v32, %v1879_v44 }
 0x421   :  { %v1887_v10 = vmul.f32 %v3401_v42, %v3401_v42 }
 0x423   :  { %v1893_v3 = vsel %vm227_vm0, %v1887_v10, 0.0 }
 0x424   :  { %1894 = vadd.xlane.f32.xlu0 %v1893_v3  ;;  %v1867_v28 = vpop.xlane.xlu1 %1866 }
 0x425   :  { %v1880_v54 = vmul.f32 %v1877_v52, %v1867_v28 }
 0x427   :  { %v3406_v16 = vsub.f32 %v1857_v12, %v1880_v54 }
 0x429   :  { %v1888_v47 = vmul.f32 %v3406_v16, %v3406_v16 }
 0x42b   :  { %v1896_v31 = vsel %vm227_vm0, %v1888_v47, 0.0 }
 0x42c   :  { %1897 = vadd.xlane.f32.xlu1 %v1896_v31  ;;  %v1870_v33 = vpop.xlane.xlu2 %1869 }
 0x42d   :  { %v1881_v15 = vmul.f32 %v1877_v52, %v1870_v33 }
 0x42f   :  { %v3411_v24 = vsub.f32 %v1858_v43, %v1881_v15 }
 0x431   :  { %v1889_v46 = vmul.f32 %v3411_v24, %v3411_v24 }
 0x433   :  { %v1899_v18 = vsel %vm227_vm0, %v1889_v46, 0.0 }
 0x434   :  { %1900 = vadd.xlane.f32.xlu2 %v1899_v18 }
 0x48f   :  { %v1892_v53 = vpop.xlane.xlu2 %1891 }
 0x490   :  { %v1902_v48 = vmul.f32 %v1892_v53, %v1877_v52 }
 0x492   :  { %v1906_v41 = vadd.f32 1e-05, %v1902_v48 }
 0x494   :  { %2322 = vrsqrt.f32 %v1906_v41  ;;  %vm1916_vm11 = vweird.f32 %v1906_v41 }
 0x497   :  { %v1895_v37 = vpop.xlane.xlu0 %1894 }
 0x498   :  { %v1903_v38 = vmul.f32 %v1895_v37, %v1877_v52 }
 0x49a   :  { %v2323_v5 = vpop.eup %2322  ;;  %v1907_v36 = vadd.f32 1e-05, %v1903_v38 }
 0x49b   :  { %v1911_v45 = vmul.f32 %v2323_v5, %v1906_v41  ;;  %vm1917_vm10 = vweird.f32 %v2323_v5 }
 0x49c   :  { %2324 = vrsqrt.f32 %v1907_v36  ;;  %vm1918_vm12 = vmor %vm1916_vm11, %vm1917_vm10  ;;  %vm1926_vm14 = vweird.f32 %v1907_v36 }
 0x49d   :  { %v1912_v6 = vmul.f32 %v2323_v5, %v1911_v45 }
 0x49f   :  { %v1913_v25 = vmul.f32 0.5, %v1912_v6  ;;  %v1898_v50 = vpop.xlane.xlu1 %1897 }
 0x4a0   :  { %v1904_v55 = vmul.f32 %v1898_v50, %v1877_v52 }
 0x4a1   :  { %v1914_v1 = vsub.f32 1.5, %v1913_v25 }
 0x4a2   :  { %v2325_v4 = vpop.eup %2324  ;;  %v1908_v30 = vadd.f32 1e-05, %v1904_v55 }
 0x4a3   :  { %v1915_v63 = vmul.f32 %v2323_v5, %v1914_v1  ;;  %v1921_v2 = vmul.f32 %v2325_v4, %v1907_v36  ;;  %vm1927_vm13 = vweird.f32 %v2325_v4 }
 0x4a4   :  { %2326 = vrsqrt.f32 %v1908_v30  ;;  %vm1928_vm15 = vmor %vm1926_vm14, %vm1927_vm13  ;;  %vm1936_vm2 = vweird.f32 %v1908_v30 }
 0x4a5   :  { %v1919_v21 = vsel %vm1918_vm12, %v2323_v5, %v1915_v63  ;;  %v1922_v56 = vmul.f32 %v2325_v4, %v1921_v2 }
 0x4a6   :  { %v1950_v8 = vmul.f32 %v1919_v21, %v1882_v0 }
 0x4a7   :  { %v1923_v9 = vmul.f32 0.5, %v1922_v56  ;;  %v1901_v7 = vpop.xlane.xlu2 %1900 }
 0x4a8   :  { %v1958_v17 = vmul.f32 %v2142_v61, %v1950_v8  ;;  %v1905_v11 = vmul.f32 %v1901_v7, %v1877_v52 }
 0x4a9   :  { %v1924_v23 = vsub.f32 1.5, %v1923_v9 }
 0x4aa   :  { %v2327_v32 = vpop.eup %2326  ;;  %v1966_v19 = vadd.f32 %v2143_v26, %v1958_v17  ;;  %v1909_v13 = vadd.f32 1e-05, %v1905_v11 }
 0x4ab   :  { %v1925_v59 = vmul.f32 %v2325_v4, %v1924_v23  ;;  %v1931_v39 = vmul.f32 %v2327_v32, %v1908_v30  ;;  %vm1937_vm1 = vweird.f32 %v2327_v32 }
 0x4ac   :  { %1974 = vst.msk [vmem:[#allocation7] sm:$0xff] %vm227_vm0, %v1966_v19  ;;  %2328 = vrsqrt.f32 %v1909_v13  ;;  %vm1938_vm3 = vmor %vm1936_vm2, %vm1937_vm1  ;;  %vm1946_vm5 = vweird.f32 %v1909_v13 }
 0x4ad   :  { %v1929_v12 = vsel %vm1928_vm15, %v2325_v4, %v1925_v59  ;;  %v1932_v60 = vmul.f32 %v2327_v32, %v1931_v39 }
 0x4ae   :  { %v1951_v27 = vmul.f32 %v1929_v12, %v3401_v42 }
 0x4af   :  { %v1933_v43 = vmul.f32 0.5, %v1932_v60 }
 0x4b0   :  { %v1959_v34 = vmul.f32 %v2142_v61, %v1951_v27 }
 0x4b1   :  { %v1934_v29 = vsub.f32 1.5, %v1933_v43 }
 0x4b2   :  { %v2329_v22 = vpop.eup %2328  ;;  %v1967_v14 = vadd.f32 %v2143_v26, %v1959_v34 }
 0x4b3   :  { %v1935_v20 = vmul.f32 %v2327_v32, %v1934_v29  ;;  %v1941_v40 = vmul.f32 %v2329_v22, %v1909_v13  ;;  %vm1947_vm4 = vweird.f32 %v2329_v22 }
 0x4b4   :  { %1975 = vst.msk [vmem:[#allocation7 + $0x8] sm:$0xff] %vm227_vm0, %v1967_v14  ;;  %vm1948_vm6 = vmor %vm1946_vm5, %vm1947_vm4 }
 0x4b5   :  { %v1939_v35 = vsel %vm1938_vm3, %v2327_v32, %v1935_v20  ;;  %v1942_v52 = vmul.f32 %v2329_v22, %v1941_v40 }
 0x4b6   :  { %v1952_v51 = vmul.f32 %v1939_v35, %v3406_v16 }
 0x4b7   :  { %v1943_v58 = vmul.f32 0.5, %v1942_v52 }
 0x4b8   :  { %v1960_v0 = vmul.f32 %v2142_v61, %v1952_v51 }
 0x4b9   :  { %v1944_v49 = vsub.f32 1.5, %v1943_v58 }
 0x4ba   :  { %v1968_v57 = vadd.f32 %v2143_v26, %v1960_v0 }
 0x4bb   :  { %v1945_v62 = vmul.f32 %v2329_v22, %v1944_v49 }
 0x4bc   :  { %1976 = vst.msk [vmem:[#allocation7 + $0x10] sm:$0xff] %vm227_vm0, %v1968_v57 }
 0x4bd   :  { %v1949_v44 = vsel %vm1948_vm6, %v2329_v22, %v1945_v62 }
 0x4be   :  { %v1953_v42 = vmul.f32 %v1949_v44, %v3411_v24 }
 0x4c0   :  { %v1961_v10 = vmul.f32 %v2142_v61, %v1953_v42 }
 0x4c2   :  { %v1969_v3 = vadd.f32 %v2143_v26, %v1961_v10 }
 0x4c4   :  { %1977 = vst.msk [vmem:[#allocation7 + $0x18] sm:$0xff] %vm227_vm0, %v1969_v3 }
 0x4c5   :  { %1990 = dma.vmem_to_hbm [thread:$0]  %s1983_s7, 512, %s1985_s27, [#allocation4], %s2467_s21, %s2467_s21, %s2468_s22  }
 0x4c6   :  { %2462 = dma.done.wait [#allocation4], 512  }
 0x4c7   :  { %2463 = vsyncadd [#allocation4], 4294966784 }
 0x4c8   :  { %2464 = dma.done.wait [#allocation9], 512  }
 0x4c9   :  { %2465 = vsyncadd [#allocation9], 4294966784 }
 0x4ca   :  { %2016 = vsyncpa [#allocation3], 1 }
 0x4cb   :  { %2017 = vsyncpa [#allocation6], 1 }
 0x4cc   :  { %2018 = vsyncpa [#allocation4], 1 }
 0x4cd   :  { %2019 = vsyncpa [#allocation9], 1 }

</bundles_post_ra>
